<compile_context>
chip_gen: v7x
topology: tpu7x:2x2x1
jax: 0.10.0
libtpu: 0.0.40
codegen_flags: <defaults>
</compile_context>

<pallas_src>
import math

import numpy as np
import jax
import jax.numpy as jnp
from jax.experimental import pallas as pl
from jax.experimental.pallas import tpu as pltpu

# ----------------------------- config (small) -------------------------------
B = 2                 # batch
S = 16                # sequence length
H = 128               # hidden size
NUM_HEADS = 2
HEAD_DIM = H // NUM_HEADS
INTERMEDIATE = 256
NUM_LAYERS = 2
VOCAB = 32
TYPE_VOCAB = 2
NER_NUM_LABELS = 4    # args.ner_num_labels
LN_EPS = 1e-12
F32 = jnp.float32
BF16 = jnp.bfloat16
BS = B * S


# ------------------------------ small helpers -------------------------------
def _gelu(x):
    # tanh-approx GELU
    c = math.sqrt(2.0 / math.pi)
    return 0.5 * x * (1.0 + jnp.tanh(c * (x + 0.044715 * x * x * x)))


def _layernorm(x, g, b):
    m = jnp.mean(x, axis=-1, keepdims=True)
    v = jnp.mean((x - m) ** 2, axis=-1, keepdims=True)
    return (x - m) * jax.lax.rsqrt(v + LN_EPS) * g + b


# ------------------------------ fused Pallas kernel --------------------------
def fused_uie_kernel(emb_ref, mask_bs_ref, mask_col_ref,
                     embg_ref, embb_ref,
                     wqkv_ref, bqkv_ref, wo_ref, bo_ref, ln1g_ref, ln1b_ref,
                     w1_ref, b1_ref, w2_ref, b2_ref, ln2g_ref, ln2b_ref,
                     nerw_ref, nerb_ref, labels_ref,
                     logits_ref, loss_ref,
                     x_scr):
    layer = pl.program_id(0)

    # -------- layer 0: embeddings LayerNorm seeds the resident activation ----
    @pl.when(layer == 0)
    def _():
        x_scr[...] = _layernorm(emb_ref[...], embg_ref[...], embb_ref[...])

    x = x_scr[...]                                           # [BS, H] f32

    mask_bs = mask_bs_ref[...]                               # [B, S]
    attn_bias = (1.0 - mask_bs)[:, None, :] * -10000.0       # [B, 1, S]
    scale = 1.0 / math.sqrt(HEAD_DIM)

    # -------- one encoder layer (this layer's weights DMA'd for this grid
    #          step; next layer's weights prefetch behind this compute) -------
    # fused QKV projection: bf16 operands, f32 accumulation
    qkv = jnp.dot(x.astype(BF16), wqkv_ref[...],
                  preferred_element_type=F32) + bqkv_ref[...]   # [BS, 3H] f32

    wo = wo_ref[...]                                         # [H, H] bf16
    attn_out = jnp.zeros((BS, H), F32)
    for h in range(NUM_HEADS):                               # static 2-iter loop
        lo = h * HEAD_DIM
        q_h = qkv[:, lo:lo + HEAD_DIM].reshape(B, S, HEAD_DIM).astype(BF16)
        k_h = qkv[:, H + lo:H + lo + HEAD_DIM].reshape(B, S, HEAD_DIM).astype(BF16)
        v_h = qkv[:, 2 * H + lo:2 * H + lo + HEAD_DIM].reshape(B, S, HEAD_DIM)

        s_h = jnp.einsum('bqd,bkd->bqk', q_h, k_h,
                         preferred_element_type=F32) * scale + attn_bias
        s_h = s_h - jnp.max(s_h, axis=-1, keepdims=True)
        p = jnp.exp(s_h)
        p = p * pl.reciprocal(jnp.sum(p, axis=-1, keepdims=True), approx=True)
        ctx_h = jnp.einsum('bqk,bkd->bqd', p.astype(BF16), v_h.astype(BF16),
                           preferred_element_type=F32).reshape(BS, HEAD_DIM)
        # fold this head straight into the output projection (no concat)
        attn_out = attn_out + jnp.dot(ctx_h.astype(BF16),
                                      wo[lo:lo + HEAD_DIM, :],
                                      preferred_element_type=F32)
    attn_out = attn_out + bo_ref[...]

    h1 = _layernorm(x + attn_out, ln1g_ref[...], ln1b_ref[...])

    ff = _gelu(jnp.dot(h1.astype(BF16), w1_ref[...],
                       preferred_element_type=F32) + b1_ref[...])
    ff = jnp.dot(ff.astype(BF16), w2_ref[...],
                 preferred_element_type=F32) + b2_ref[...]
    x_new = _layernorm(h1 + ff, ln2g_ref[...], ln2b_ref[...])
    x_scr[...] = x_new

    # -------- last layer: NER pointer heads + masked BCE-with-logits loss ----
    @pl.when(layer == NUM_LAYERS - 1)
    def _():
        logits = jnp.dot(x_new.astype(BF16), nerw_ref[...],
                         preferred_element_type=F32) + nerb_ref[...]   # [BS, 2L]
        logits_ref[...] = logits

        labels = labels_ref[...]                             # [BS, 2L]
        m = mask_col_ref[...]                                # [BS, 1]
        bce = (jnp.maximum(logits, 0.0) - logits * labels
               + jnp.log(1.0 + jnp.exp(-jnp.abs(logits))))
        num = jnp.sum(jnp.sum(bce * m, axis=0, keepdims=True),
                      axis=1, keepdims=True)                 # [1, 1]
        den = jnp.sum(m, axis=0, keepdims=True)              # [1, 1]
        loss_ref[...] = num * pl.reciprocal(den, approx=True)


# ------------------------------ parameter init -------------------------------
def init_params(key):
    ks = list(jax.random.split(key, 16))
    kit = iter(ks)
    std = 0.02

    def nrm(shape, dtype=F32):
        return (std * jax.random.normal(next(kit), shape)).astype(dtype)

    NL, L = NUM_LAYERS, NER_NUM_LABELS
    return {
        "word_emb": nrm((VOCAB, H)),
        "pos_emb": nrm((S, H)),
        "type_emb": nrm((TYPE_VOCAB, H)),
        "emb_ln_g": jnp.ones((1, H), F32),
        "emb_ln_b": jnp.zeros((1, H), F32),
        # encoder weights stacked over layers; QKV packed as [H, 3H]; bf16 store
        "wqkv": nrm((NL, H, 3 * H), BF16),
        "bqkv": nrm((NL, 1, 3 * H)),
        "wo": nrm((NL, H, H), BF16),
        "bo": nrm((NL, 1, H)),
        "ln1_g": jnp.ones((NL, 1, H), F32),
        "ln1_b": jnp.zeros((NL, 1, H), F32),
        "w1": nrm((NL, H, INTERMEDIATE), BF16),
        "b1": nrm((NL, 1, INTERMEDIATE)),
        "w2": nrm((NL, INTERMEDIATE, H), BF16),
        "b2": nrm((NL, 1, H)),
        "ln2_g": jnp.ones((NL, 1, H), F32),
        "ln2_b": jnp.zeros((NL, 1, H), F32),
        # pointer heads pre-transposed: logits = x @ ner_w + ner_b,
        # columns [0:L] = start heads, [L:2L] = end heads
        "ner_w": nrm((H, 2 * NER_NUM_LABELS), BF16),
        "ner_b": nrm((1, 2 * NER_NUM_LABELS)),
    }


# ------------------------------ model forward --------------------------------
@jax.jit
def uie_forward(params, ner_input_ids, ner_token_type_ids, ner_attention_mask,
                ner_start_labels, ner_end_labels):
    """UIEModel.forward with tasks=['ner'] (NER branch)."""
    L = NER_NUM_LABELS
    mask_f = ner_attention_mask.astype(F32)                  # [B, S]

    # BERT embeddings (gather = glue outside the kernel)
    we = jnp.take(params["word_emb"], ner_input_ids, axis=0)  # [B, S, H]
    te = jnp.take(params["type_emb"], ner_token_type_ids, axis=0)
    emb = (we + params["pos_emb"][None, :, :] + te).reshape(BS, H)

    mask_col = mask_f.reshape(BS, 1)
    labels_packed = jnp.concatenate(
        [jnp.transpose(ner_start_labels, (0, 2, 1)).reshape(BS, L),
         jnp.transpose(ner_end_labels, (0, 2, 1)).reshape(BS, L)],
        axis=1)                                              # [BS, 2L]

    VMEM = pltpu.MemorySpace.VMEM

    def const_spec(shape):           # resident across all layer steps
        return pl.BlockSpec(shape, lambda l: (0, 0), memory_space=VMEM)

    def layer_spec(shape):           # layer-indexed (prefetch of layer l+1)
        return pl.BlockSpec((None,) + shape, lambda l: (l, 0, 0),
                            memory_space=VMEM)

    in_specs = [
        const_spec((BS, H)),             # emb
        const_spec((B, S)),              # mask_bs
        const_spec((BS, 1)),             # mask_col
        const_spec((1, H)),              # emb_ln_g
        const_spec((1, H)),              # emb_ln_b
        layer_spec((H, 3 * H)),          # wqkv
        layer_spec((1, 3 * H)),          # bqkv
        layer_spec((H, H)),              # wo
        layer_spec((1, H)),              # bo
        layer_spec((1, H)),              # ln1_g
        layer_spec((1, H)),              # ln1_b
        layer_spec((H, INTERMEDIATE)),   # w1
        layer_spec((1, INTERMEDIATE)),   # b1
        layer_spec((INTERMEDIATE, H)),   # w2
        layer_spec((1, H)),              # b2
        layer_spec((1, H)),              # ln2_g
        layer_spec((1, H)),              # ln2_b
        const_spec((H, 2 * L)),          # ner_w (pre-transposed)
        const_spec((1, 2 * L)),          # ner_b
        const_spec((BS, 2 * L)),         # labels
    ]
    out_specs = (const_spec((BS, 2 * L)), const_spec((1, 1)))

    logits, loss = pl.pallas_call(
        fused_uie_kernel,
        grid=(NUM_LAYERS,),
        in_specs=in_specs,
        out_specs=out_specs,
        out_shape=(jax.ShapeDtypeStruct((BS, 2 * L), F32),
                   jax.ShapeDtypeStruct((1, 1), F32)),
        scratch_shapes=[pltpu.VMEM((BS, H), F32)],           # resident activation
        compiler_params=pltpu.CompilerParams(
            dimension_semantics=("arbitrary",),
            vmem_limit_bytes=16 * 1024 * 1024),
    )(emb, mask_f, mask_col,
      params["emb_ln_g"], params["emb_ln_b"],
      params["wqkv"], params["bqkv"], params["wo"], params["bo"],
      params["ln1_g"], params["ln1_b"],
      params["w1"], params["b1"], params["w2"], params["b2"],
      params["ln2_g"], params["ln2_b"],
      params["ner_w"], params["ner_b"], labels_packed)

    logits_bsl = logits.reshape(B, S, 2 * L)
    ner_output = {
        # match PyTorch: list-of-[B,S] per label -> stacked [L, B, S]
        "ner_start_logits": jnp.transpose(logits_bsl[..., :L], (2, 0, 1)),
        "ner_end_logits": jnp.transpose(logits_bsl[..., L:], (2, 0, 1)),
        "ner_loss": loss[0, 0],
    }
    return {"ner_output": ner_output, "re_output": None, "event_output": None}


# ------------------------------ pure-JAX reference ---------------------------
def reference_forward(params, ids, type_ids, mask, start_labels, end_labels):
    L = NER_NUM_LABELS
    mask_f = mask.astype(F32)
    emb = (jnp.take(params["word_emb"], ids, axis=0)
           + params["pos_emb"][None]
           + jnp.take(params["type_emb"], type_ids, axis=0))          # [B,S,H]
    x = _layernorm(emb, params["emb_ln_g"], params["emb_ln_b"])

    bias = (1.0 - mask_f)[:, None, :] * -10000.0
    scale = 1.0 / math.sqrt(HEAD_DIM)

    def mm(a, w):   # bf16 operands, f32 accumulation (mirrors the kernel)
        return jnp.dot(a.astype(BF16), w, preferred_element_type=F32)

    for l in range(NUM_LAYERS):
        qkv = mm(x, params["wqkv"][l]) + params["bqkv"][l]             # [B,S,3H]
        attn = jnp.zeros_like(x)
        for h in range(NUM_HEADS):
            lo, hi = h * HEAD_DIM, (h + 1) * HEAD_DIM
            q_h = qkv[..., lo:hi]
            k_h = qkv[..., H + lo:H + hi]
            v_h = qkv[..., 2 * H + lo:2 * H + hi]
            sc = jnp.einsum('bqd,bkd->bqk', q_h.astype(BF16), k_h.astype(BF16),
                            preferred_element_type=F32) * scale + bias
            p = jax.nn.softmax(sc, axis=-1)
            ctx = jnp.einsum('bqk,bkd->bqd', p.astype(BF16), v_h.astype(BF16),
                             preferred_element_type=F32)
            attn = attn + mm(ctx, params["wo"][l][lo:hi, :])
        h1 = _layernorm(x + attn + params["bo"][l],
                        params["ln1_g"][l], params["ln1_b"][l])
        ff = _gelu(mm(h1, params["w1"][l]) + params["b1"][l])
        ff = mm(ff, params["w2"][l]) + params["b2"][l]
        x = _layernorm(h1 + ff, params["ln2_g"][l], params["ln2_b"][l])

    logits = mm(x, params["ner_w"]) + params["ner_b"]                  # [B,S,2L]
    sl = jnp.transpose(logits[..., :L], (0, 2, 1))                     # [B,L,S]
    el = jnp.transpose(logits[..., L:], (0, 2, 1))

    def bce(z, t):
        return jnp.maximum(z, 0.0) - z * t + jnp.log1p(jnp.exp(-jnp.abs(z)))

    m3 = mask_f[:, None, :]
    loss = jnp.sum((bce(sl, start_labels) + bce(el, end_labels)) * m3) / jnp.sum(mask_f)
    return sl, el, loss


# ------------------------------------ main ------------------------------------
if __name__ == "__main__":
    key = jax.random.PRNGKey(0)
    kp, kid, ksl, kel = jax.random.split(key, 4)

    params = init_params(kp)

    ner_input_ids = jax.random.randint(kid, (B, S), 1, VOCAB, dtype=jnp.int32)
    ner_token_type_ids = jnp.zeros((B, S), jnp.int32)
    # attention mask: mostly ones, last 3 tokens of batch 1 padded
    mask_np = np.ones((B, S), np.int32)
    mask_np[1, -3:] = 0
    ner_attention_mask = jnp.asarray(mask_np)
    ner_start_labels = jax.random.bernoulli(
        ksl, 0.1, (B, NER_NUM_LABELS, S)).astype(F32)
    ner_end_labels = jax.random.bernoulli(
        kel, 0.1, (B, NER_NUM_LABELS, S)).astype(F32)

    out = uie_forward(params, ner_input_ids, ner_token_type_ids,
                      ner_attention_mask, ner_start_labels, ner_end_labels)
    out = jax.block_until_ready(out)

    # correctness check against pure-JAX reference (same bf16 weight storage;
    # tolerance absorbs approx-reciprocal softmax & accumulation-order diffs)
    sl_ref, el_ref, loss_ref = reference_forward(
        params, ner_input_ids, ner_token_type_ids, ner_attention_mask,
        ner_start_labels, ner_end_labels)
    sl_k = jnp.transpose(out["ner_output"]["ner_start_logits"], (1, 0, 2))
    el_k = jnp.transpose(out["ner_output"]["ner_end_logits"], (1, 0, 2))

    assert np.allclose(np.asarray(sl_k), np.asarray(sl_ref), rtol=2e-2, atol=2e-2)
    assert np.allclose(np.asarray(el_k), np.asarray(el_ref), rtol=2e-2, atol=2e-2)
    assert np.allclose(np.asarray(out["ner_output"]["ner_loss"]),
                       np.asarray(loss_ref), rtol=2e-2, atol=2e-2)
    assert np.isfinite(np.asarray(out["ner_output"]["ner_loss"]))

    print("KERNEL_OK")
</pallas_src>

<mosaic_0001>
module attributes {stable_mosaic.version = 11 : i64} {
  func.func @fused_uie_kernel(%arg0: i32, %arg1: memref<32x128xf32, #tpu.memory_space<vmem>>, %arg2: memref<2x16xf32, #tpu.memory_space<vmem>>, %arg3: memref<32x1xf32, #tpu.memory_space<vmem>>, %arg4: memref<1x128xf32, #tpu.memory_space<vmem>>, %arg5: memref<1x128xf32, #tpu.memory_space<vmem>>, %arg6: memref<1x128x384xbf16, #tpu.memory_space<vmem>>, %arg7: memref<1x1x384xf32, #tpu.memory_space<vmem>>, %arg8: memref<1x128x128xbf16, #tpu.memory_space<vmem>>, %arg9: memref<1x1x128xf32, #tpu.memory_space<vmem>>, %arg10: memref<1x1x128xf32, #tpu.memory_space<vmem>>, %arg11: memref<1x1x128xf32, #tpu.memory_space<vmem>>, %arg12: memref<1x128x256xbf16, #tpu.memory_space<vmem>>, %arg13: memref<1x1x256xf32, #tpu.memory_space<vmem>>, %arg14: memref<1x256x128xbf16, #tpu.memory_space<vmem>>, %arg15: memref<1x1x128xf32, #tpu.memory_space<vmem>>, %arg16: memref<1x1x128xf32, #tpu.memory_space<vmem>>, %arg17: memref<1x1x128xf32, #tpu.memory_space<vmem>>, %arg18: memref<128x8xbf16, #tpu.memory_space<vmem>>, %arg19: memref<1x8xf32, #tpu.memory_space<vmem>>, %arg20: memref<32x8xf32, #tpu.memory_space<vmem>>, %arg21: memref<32x8xf32, #tpu.memory_space<vmem>>, %arg22: memref<1x1xf32, #tpu.memory_space<vmem>>, %arg23: memref<32x128xf32, #tpu.memory_space<vmem>>) attributes {dimension_semantics = [#tpu.dimension_semantics<arbitrary>], iteration_bounds = array<i64: 2>, scalar_prefetch = 0 : i64, scratch_operands = 1 : i64, tpu.core_type = #tpu.core_type<tc>, window_params = [{pipeline_mode = #tpu.pipeline_mode<synchronous>, transform_indices = @transform_0, window_bounds = array<i64: 32, 128>}, {pipeline_mode = #tpu.pipeline_mode<synchronous>, transform_indices = @transform_1, window_bounds = array<i64: 2, 16>}, {pipeline_mode = #tpu.pipeline_mode<synchronous>, transform_indices = @transform_2, window_bounds = array<i64: 32, 1>}, {pipeline_mode = #tpu.pipeline_mode<synchronous>, transform_indices = @transform_3, window_bounds = array<i64: 1, 128>}, {pipeline_mode = #tpu.pipeline_mode<synchronous>, transform_indices = @transform_4, window_bounds = array<i64: 1, 128>}, {transform_indices = @transform_5, window_bounds = array<i64: 1, 128, 384>}, {transform_indices = @transform_6, window_bounds = array<i64: 1, 1, 384>}, {transform_indices = @transform_7, window_bounds = array<i64: 1, 128, 128>}, {transform_indices = @transform_8, window_bounds = array<i64: 1, 1, 128>}, {transform_indices = @transform_9, window_bounds = array<i64: 1, 1, 128>}, {transform_indices = @transform_10, window_bounds = array<i64: 1, 1, 128>}, {transform_indices = @transform_11, window_bounds = array<i64: 1, 128, 256>}, {transform_indices = @transform_12, window_bounds = array<i64: 1, 1, 256>}, {transform_indices = @transform_13, window_bounds = array<i64: 1, 256, 128>}, {transform_indices = @transform_14, window_bounds = array<i64: 1, 1, 128>}, {transform_indices = @transform_15, window_bounds = array<i64: 1, 1, 128>}, {transform_indices = @transform_16, window_bounds = array<i64: 1, 1, 128>}, {pipeline_mode = #tpu.pipeline_mode<synchronous>, transform_indices = @transform_17, window_bounds = array<i64: 128, 8>}, {pipeline_mode = #tpu.pipeline_mode<synchronous>, transform_indices = @transform_18, window_bounds = array<i64: 1, 8>}, {pipeline_mode = #tpu.pipeline_mode<synchronous>, transform_indices = @transform_19, window_bounds = array<i64: 32, 8>}, {pipeline_mode = #tpu.pipeline_mode<synchronous>, transform_indices = @transform_20, window_bounds = array<i64: 32, 8>}, {pipeline_mode = #tpu.pipeline_mode<synchronous>, transform_indices = @transform_21, window_bounds = array<i64: 1, 1>}]} {
    %c0_i32 = arith.constant 0 : i32
    %0 = arith.cmpi eq, %arg0, %c0_i32 : i32
    %1 = arith.extui %0 : i1 to i32
    %c0_i32_0 = arith.constant 0 : i32
    %2 = arith.cmpi ne, %1, %c0_i32_0 : i32
    scf.if %2 {
      %c0_74 = arith.constant 0 : index
      %c0_75 = arith.constant 0 : index
      %174 = vector.load %arg1[%c0_74, %c0_75] : memref<32x128xf32, #tpu.memory_space<vmem>>, vector<32x128xf32>
      %c0_76 = arith.constant 0 : index
      %c0_77 = arith.constant 0 : index
      %175 = vector.load %arg4[%c0_76, %c0_77] : memref<1x128xf32, #tpu.memory_space<vmem>>, vector<1x128xf32>
      %c0_78 = arith.constant 0 : index
      %c0_79 = arith.constant 0 : index
      %176 = vector.load %arg5[%c0_78, %c0_79] : memref<1x128xf32, #tpu.memory_space<vmem>>, vector<1x128xf32>
      %cst_80 = arith.constant dense<0.000000e+00> : vector<32xf32>
      %177 = vector.multi_reduction <add>, %174, %cst_80 [1] : vector<32x128xf32> to vector<32xf32>
      %178 = vector.shape_cast %177 : vector<32xf32> to vector<32x1xf32>
      %cst_81 = arith.constant 1.280000e+02 : f32
      %179 = vector.broadcast %cst_81 : f32 to vector<32x1xf32>
      %180 = arith.divf %178, %179 : vector<32x1xf32>
      %181 = vector.broadcast %180 : vector<32x1xf32> to vector<32x128xf32>
      %182 = arith.subf %174, %181 : vector<32x128xf32>
      %183 = arith.mulf %182, %182 : vector<32x128xf32>
      %cst_82 = arith.constant dense<0.000000e+00> : vector<32xf32>
      %184 = vector.multi_reduction <add>, %183, %cst_82 [1] : vector<32x128xf32> to vector<32xf32>
      %185 = vector.shape_cast %184 : vector<32xf32> to vector<32x1xf32>
      %cst_83 = arith.constant 1.280000e+02 : f32
      %186 = vector.broadcast %cst_83 : f32 to vector<32x1xf32>
      %187 = arith.divf %185, %186 : vector<32x1xf32>
      %188 = vector.broadcast %180 : vector<32x1xf32> to vector<32x128xf32>
      %189 = arith.subf %174, %188 : vector<32x128xf32>
      %cst_84 = arith.constant 9.99999996E-13 : f32
      %190 = vector.broadcast %cst_84 : f32 to vector<32x1xf32>
      %191 = arith.addf %187, %190 : vector<32x1xf32>
      %192 = math.rsqrt %191 : vector<32x1xf32>
      %193 = vector.broadcast %192 : vector<32x1xf32> to vector<32x128xf32>
      %194 = arith.mulf %189, %193 : vector<32x128xf32>
      %195 = vector.broadcast %175 : vector<1x128xf32> to vector<32x128xf32>
      %196 = arith.mulf %194, %195 : vector<32x128xf32>
      %197 = vector.broadcast %176 : vector<1x128xf32> to vector<32x128xf32>
      %198 = arith.addf %196, %197 : vector<32x128xf32>
      %c0_85 = arith.constant 0 : index
      %c0_86 = arith.constant 0 : index
      %199 = vector.load %arg23[%c0_85, %c0_86] : memref<32x128xf32, #tpu.memory_space<vmem>>, vector<32x128xf32>
      tpu.vector_store %arg23[%c0_85, %c0_86], %198 {strides = array<i32>} : memref<32x128xf32, #tpu.memory_space<vmem>>, vector<32x128xf32>,
    } else {
    }
    %c0 = arith.constant 0 : index
    %c0_1 = arith.constant 0 : index
    %3 = vector.load %arg23[%c0, %c0_1] : memref<32x128xf32, #tpu.memory_space<vmem>>, vector<32x128xf32>
    %c0_2 = arith.constant 0 : index
    %c0_3 = arith.constant 0 : index
    %4 = vector.load %arg2[%c0_2, %c0_3] : memref<2x16xf32, #tpu.memory_space<vmem>>, vector<2x16xf32>
    %cst = arith.constant 1.000000e+00 : f32
    %5 = vector.broadcast %cst : f32 to vector<2x16xf32>
    %6 = arith.subf %5, %4 : vector<2x16xf32>
    %7 = vector.shape_cast %6 : vector<2x16xf32> to vector<2x1x16xf32>
    %cst_4 = arith.constant -1.000000e+04 : f32
    %8 = vector.broadcast %cst_4 : f32 to vector<2x1x16xf32>
    %9 = arith.mulf %7, %8 : vector<2x1x16xf32>
    %10 = arith.truncf %3 : vector<32x128xf32> to vector<32x128xbf16>
    %c0_5 = arith.constant 0 : index
    %c0_6 = arith.constant 0 : index
    %c0_7 = arith.constant 0 : index
    %11 = vector.load %arg6[%c0_5, %c0_6, %c0_7] : memref<1x128x384xbf16, #tpu.memory_space<vmem>>, vector<1x128x384xbf16>
    %12 = vector.shape_cast %11 : vector<1x128x384xbf16> to vector<128x384xbf16>
    %cst_8 = arith.constant dense<0.000000e+00> : vector<32x384xf32>
    %13 = tpu.matmul %10, %12, %cst_8 {dimension_numbers = #tpu.dot_dimension_numbers<[1], [0], [0], [1], [0, 0, 1, 1], [], []>} : vector<32x128xbf16>, vector<128x384xbf16>, vector<32x384xf32> -> vector<32x384xf32>
    %c0_9 = arith.constant 0 : index
    %c0_10 = arith.constant 0 : index
    %c0_11 = arith.constant 0 : index
    %14 = vector.load %arg7[%c0_9, %c0_10, %c0_11] : memref<1x1x384xf32, #tpu.memory_space<vmem>>, vector<1x1x384xf32>
    %15 = vector.shape_cast %14 : vector<1x1x384xf32> to vector<1x384xf32>
    %16 = vector.broadcast %15 : vector<1x384xf32> to vector<32x384xf32>
    %17 = arith.addf %13, %16 : vector<32x384xf32>
    %c0_12 = arith.constant 0 : index
    %c0_13 = arith.constant 0 : index
    %c0_14 = arith.constant 0 : index
    %18 = vector.load %arg8[%c0_12, %c0_13, %c0_14] : memref<1x128x128xbf16, #tpu.memory_space<vmem>>, vector<1x128x128xbf16>
    %19 = vector.shape_cast %18 : vector<1x128x128xbf16> to vector<128x128xbf16>
    %cst_15 = arith.constant 0.000000e+00 : f32
    %20 = vector.broadcast %cst_15 : f32 to vector<32x128xf32>
    %21 = vector.extract_strided_slice %17 {offsets = [0, 0], sizes = [32, 64], strides = [1, 1]} : vector<32x384xf32> to vector<32x64xf32>
    %22 = vector.shape_cast %21 : vector<32x64xf32> to vector<2x16x64xf32>
    %23 = arith.truncf %22 : vector<2x16x64xf32> to vector<2x16x64xbf16>
    %24 = vector.extract_strided_slice %17 {offsets = [0, 128], sizes = [32, 64], strides = [1, 1]} : vector<32x384xf32> to vector<32x64xf32>
    %25 = vector.shape_cast %24 : vector<32x64xf32> to vector<2x16x64xf32>
    %26 = arith.truncf %25 : vector<2x16x64xf32> to vector<2x16x64xbf16>
    %27 = vector.extract_strided_slice %17 {offsets = [0, 256], sizes = [32, 64], strides = [1, 1]} : vector<32x384xf32> to vector<32x64xf32>
    %28 = vector.shape_cast %27 : vector<32x64xf32> to vector<2x16x64xf32>
    "tpu.trace_start"() <{level = 10 : i32, message = "bqd,bkd->bqk"}> : () -> ()
    %cst_16 = arith.constant dense<0.000000e+00> : vector<2x16x16xf32>
    %29 = tpu.matmul %23, %26, %cst_16 {dimension_numbers = #tpu.dot_dimension_numbers<[2], [2], [1], [1], [0, 0, 0, 1, 1, 1], [0], [0]>} : vector<2x16x64xbf16>, vector<2x16x64xbf16>, vector<2x16x16xf32> -> vector<2x16x16xf32>
    "tpu.trace_stop"() : () -> ()
    %cst_17 = arith.constant 1.250000e-01 : f32
    %30 = vector.broadcast %cst_17 : f32 to vector<2x16x16xf32>
    %31 = arith.mulf %29, %30 : vector<2x16x16xf32>
    %32 = vector.broadcast %9 : vector<2x1x16xf32> to vector<2x16x16xf32>
    %33 = arith.addf %31, %32 : vector<2x16x16xf32>
    %cst_18 = arith.constant dense<0xFF800000> : vector<2x16xf32>
    %34 = vector.multi_reduction <maximumf>, %33, %cst_18 [2] : vector<2x16x16xf32> to vector<2x16xf32>
    %35 = vector.shape_cast %34 : vector<2x16xf32> to vector<2x16x1xf32>
    %36 = vector.broadcast %35 : vector<2x16x1xf32> to vector<2x16x16xf32>
    %37 = arith.subf %33, %36 : vector<2x16x16xf32>
    %38 = math.exp %37 : vector<2x16x16xf32>
    %cst_19 = arith.constant dense<0.000000e+00> : vector<2x16xf32>
    %39 = vector.multi_reduction <add>, %38, %cst_19 [2] : vector<2x16x16xf32> to vector<2x16xf32>
    %40 = vector.shape_cast %39 : vector<2x16xf32> to vector<2x16x1xf32>
    %41 = tpu.reciprocal %40 {approx = true} : vector<2x16x1xf32> -> vector<2x16x1xf32>
    %42 = vector.broadcast %41 : vector<2x16x1xf32> to vector<2x16x16xf32>
    %43 = arith.mulf %38, %42 : vector<2x16x16xf32>
    %44 = arith.truncf %43 : vector<2x16x16xf32> to vector<2x16x16xbf16>
    %45 = arith.truncf %28 : vector<2x16x64xf32> to vector<2x16x64xbf16>
    "tpu.trace_start"() <{level = 10 : i32, message = "bqk,bkd->bqd"}> : () -> ()
    %cst_20 = arith.constant dense<0.000000e+00> : vector<2x16x64xf32>
    %46 = tpu.matmul %44, %45, %cst_20 {dimension_numbers = #tpu.dot_dimension_numbers<[2], [1], [1], [2], [0, 0, 0, 1, 1, 2], [0], [0]>} : vector<2x16x16xbf16>, vector<2x16x64xbf16>, vector<2x16x64xf32> -> vector<2x16x64xf32>
    "tpu.trace_stop"() : () -> ()
    %47 = vector.shape_cast %46 : vector<2x16x64xf32> to vector<32x64xf32>
    %48 = arith.truncf %47 : vector<32x64xf32> to vector<32x64xbf16>
    %49 = vector.extract_strided_slice %19 {offsets = [0, 0], sizes = [64, 128], strides = [1, 1]} : vector<128x128xbf16> to vector<64x128xbf16>
    %cst_21 = arith.constant dense<0.000000e+00> : vector<32x128xf32>
    %50 = tpu.matmul %48, %49, %cst_21 {dimension_numbers = #tpu.dot_dimension_numbers<[1], [0], [0], [1], [0, 0, 1, 1], [], []>} : vector<32x64xbf16>, vector<64x128xbf16>, vector<32x128xf32> -> vector<32x128xf32>
    %51 = arith.addf %20, %50 : vector<32x128xf32>
    %52 = vector.extract_strided_slice %17 {offsets = [0, 64], sizes = [32, 64], strides = [1, 1]} : vector<32x384xf32> to vector<32x64xf32>
    %53 = vector.shape_cast %52 : vector<32x64xf32> to vector<2x16x64xf32>
    %54 = arith.truncf %53 : vector<2x16x64xf32> to vector<2x16x64xbf16>
    %55 = vector.extract_strided_slice %17 {offsets = [0, 192], sizes = [32, 64], strides = [1, 1]} : vector<32x384xf32> to vector<32x64xf32>
    %56 = vector.shape_cast %55 : vector<32x64xf32> to vector<2x16x64xf32>
    %57 = arith.truncf %56 : vector<2x16x64xf32> to vector<2x16x64xbf16>
    %58 = vector.extract_strided_slice %17 {offsets = [0, 320], sizes = [32, 64], strides = [1, 1]} : vector<32x384xf32> to vector<32x64xf32>
    %59 = vector.shape_cast %58 : vector<32x64xf32> to vector<2x16x64xf32>
    "tpu.trace_start"() <{level = 10 : i32, message = "bqd,bkd->bqk"}> : () -> ()
    %cst_22 = arith.constant dense<0.000000e+00> : vector<2x16x16xf32>
    %60 = tpu.matmul %54, %57, %cst_22 {dimension_numbers = #tpu.dot_dimension_numbers<[2], [2], [1], [1], [0, 0, 0, 1, 1, 1], [0], [0]>} : vector<2x16x64xbf16>, vector<2x16x64xbf16>, vector<2x16x16xf32> -> vector<2x16x16xf32>
    "tpu.trace_stop"() : () -> ()
    %cst_23 = arith.constant 1.250000e-01 : f32
    %61 = vector.broadcast %cst_23 : f32 to vector<2x16x16xf32>
    %62 = arith.mulf %60, %61 : vector<2x16x16xf32>
    %63 = vector.broadcast %9 : vector<2x1x16xf32> to vector<2x16x16xf32>
    %64 = arith.addf %62, %63 : vector<2x16x16xf32>
    %cst_24 = arith.constant dense<0xFF800000> : vector<2x16xf32>
    %65 = vector.multi_reduction <maximumf>, %64, %cst_24 [2] : vector<2x16x16xf32> to vector<2x16xf32>
    %66 = vector.shape_cast %65 : vector<2x16xf32> to vector<2x16x1xf32>
    %67 = vector.broadcast %66 : vector<2x16x1xf32> to vector<2x16x16xf32>
    %68 = arith.subf %64, %67 : vector<2x16x16xf32>
    %69 = math.exp %68 : vector<2x16x16xf32>
    %cst_25 = arith.constant dense<0.000000e+00> : vector<2x16xf32>
    %70 = vector.multi_reduction <add>, %69, %cst_25 [2] : vector<2x16x16xf32> to vector<2x16xf32>
    %71 = vector.shape_cast %70 : vector<2x16xf32> to vector<2x16x1xf32>
    %72 = tpu.reciprocal %71 {approx = true} : vector<2x16x1xf32> -> vector<2x16x1xf32>
    %73 = vector.broadcast %72 : vector<2x16x1xf32> to vector<2x16x16xf32>
    %74 = arith.mulf %69, %73 : vector<2x16x16xf32>
    %75 = arith.truncf %74 : vector<2x16x16xf32> to vector<2x16x16xbf16>
    %76 = arith.truncf %59 : vector<2x16x64xf32> to vector<2x16x64xbf16>
    "tpu.trace_start"() <{level = 10 : i32, message = "bqk,bkd->bqd"}> : () -> ()
    %cst_26 = arith.constant dense<0.000000e+00> : vector<2x16x64xf32>
    %77 = tpu.matmul %75, %76, %cst_26 {dimension_numbers = #tpu.dot_dimension_numbers<[2], [1], [1], [2], [0, 0, 0, 1, 1, 2], [0], [0]>} : vector<2x16x16xbf16>, vector<2x16x64xbf16>, vector<2x16x64xf32> -> vector<2x16x64xf32>
    "tpu.trace_stop"() : () -> ()
    %78 = vector.shape_cast %77 : vector<2x16x64xf32> to vector<32x64xf32>
    %79 = arith.truncf %78 : vector<32x64xf32> to vector<32x64xbf16>
    %80 = vector.extract_strided_slice %19 {offsets = [64, 0], sizes = [64, 128], strides = [1, 1]} : vector<128x128xbf16> to vector<64x128xbf16>
    %cst_27 = arith.constant dense<0.000000e+00> : vector<32x128xf32>
    %81 = tpu.matmul %79, %80, %cst_27 {dimension_numbers = #tpu.dot_dimension_numbers<[1], [0], [0], [1], [0, 0, 1, 1], [], []>} : vector<32x64xbf16>, vector<64x128xbf16>, vector<32x128xf32> -> vector<32x128xf32>
    %82 = arith.addf %51, %81 : vector<32x128xf32>
    %c0_28 = arith.constant 0 : index
    %c0_29 = arith.constant 0 : index
    %c0_30 = arith.constant 0 : index
    %83 = vector.load %arg9[%c0_28, %c0_29, %c0_30] : memref<1x1x128xf32, #tpu.memory_space<vmem>>, vector<1x1x128xf32>
    %84 = vector.shape_cast %83 : vector<1x1x128xf32> to vector<1x128xf32>
    %85 = vector.broadcast %84 : vector<1x128xf32> to vector<32x128xf32>
    %86 = arith.addf %82, %85 : vector<32x128xf32>
    %87 = arith.addf %3, %86 : vector<32x128xf32>
    %c0_31 = arith.constant 0 : index
    %c0_32 = arith.constant 0 : index
    %c0_33 = arith.constant 0 : index
    %88 = vector.load %arg10[%c0_31, %c0_32, %c0_33] : memref<1x1x128xf32, #tpu.memory_space<vmem>>, vector<1x1x128xf32>
    %89 = vector.shape_cast %88 : vector<1x1x128xf32> to vector<1x128xf32>
    %c0_34 = arith.constant 0 : index
    %c0_35 = arith.constant 0 : index
    %c0_36 = arith.constant 0 : index
    %90 = vector.load %arg11[%c0_34, %c0_35, %c0_36] : memref<1x1x128xf32, #tpu.memory_space<vmem>>, vector<1x1x128xf32>
    %91 = vector.shape_cast %90 : vector<1x1x128xf32> to vector<1x128xf32>
    %cst_37 = arith.constant dense<0.000000e+00> : vector<32xf32>
    %92 = vector.multi_reduction <add>, %87, %cst_37 [1] : vector<32x128xf32> to vector<32xf32>
    %93 = vector.shape_cast %92 : vector<32xf32> to vector<32x1xf32>
    %cst_38 = arith.constant 1.280000e+02 : f32
    %94 = vector.broadcast %cst_38 : f32 to vector<32x1xf32>
    %95 = arith.divf %93, %94 : vector<32x1xf32>
    %96 = vector.broadcast %95 : vector<32x1xf32> to vector<32x128xf32>
    %97 = arith.subf %87, %96 : vector<32x128xf32>
    %98 = arith.mulf %97, %97 : vector<32x128xf32>
    %cst_39 = arith.constant dense<0.000000e+00> : vector<32xf32>
    %99 = vector.multi_reduction <add>, %98, %cst_39 [1] : vector<32x128xf32> to vector<32xf32>
    %100 = vector.shape_cast %99 : vector<32xf32> to vector<32x1xf32>
    %cst_40 = arith.constant 1.280000e+02 : f32
    %101 = vector.broadcast %cst_40 : f32 to vector<32x1xf32>
    %102 = arith.divf %100, %101 : vector<32x1xf32>
    %103 = vector.broadcast %95 : vector<32x1xf32> to vector<32x128xf32>
    %104 = arith.subf %87, %103 : vector<32x128xf32>
    %cst_41 = arith.constant 9.99999996E-13 : f32
    %105 = vector.broadcast %cst_41 : f32 to vector<32x1xf32>
    %106 = arith.addf %102, %105 : vector<32x1xf32>
    %107 = math.rsqrt %106 : vector<32x1xf32>
    %108 = vector.broadcast %107 : vector<32x1xf32> to vector<32x128xf32>
    %109 = arith.mulf %104, %108 : vector<32x128xf32>
    %110 = vector.broadcast %89 : vector<1x128xf32> to vector<32x128xf32>
    %111 = arith.mulf %109, %110 : vector<32x128xf32>
    %112 = vector.broadcast %91 : vector<1x128xf32> to vector<32x128xf32>
    %113 = arith.addf %111, %112 : vector<32x128xf32>
    %114 = arith.truncf %113 : vector<32x128xf32> to vector<32x128xbf16>
    %c0_42 = arith.constant 0 : index
    %c0_43 = arith.constant 0 : index
    %c0_44 = arith.constant 0 : index
    %115 = vector.load %arg12[%c0_42, %c0_43, %c0_44] : memref<1x128x256xbf16, #tpu.memory_space<vmem>>, vector<1x128x256xbf16>
    %116 = vector.shape_cast %115 : vector<1x128x256xbf16> to vector<128x256xbf16>
    %cst_45 = arith.constant dense<0.000000e+00> : vector<32x256xf32>
    %117 = tpu.matmul %114, %116, %cst_45 {dimension_numbers = #tpu.dot_dimension_numbers<[1], [0], [0], [1], [0, 0, 1, 1], [], []>} : vector<32x128xbf16>, vector<128x256xbf16>, vector<32x256xf32> -> vector<32x256xf32>
    %c0_46 = arith.constant 0 : index
    %c0_47 = arith.constant 0 : index
    %c0_48 = arith.constant 0 : index
    %118 = vector.load %arg13[%c0_46, %c0_47, %c0_48] : memref<1x1x256xf32, #tpu.memory_space<vmem>>, vector<1x1x256xf32>
    %119 = vector.shape_cast %118 : vector<1x1x256xf32> to vector<1x256xf32>
    %120 = vector.broadcast %119 : vector<1x256xf32> to vector<32x256xf32>
    %121 = arith.addf %117, %120 : vector<32x256xf32>
    %cst_49 = arith.constant 5.000000e-01 : f32
    %122 = vector.broadcast %cst_49 : f32 to vector<32x256xf32>
    %123 = arith.mulf %122, %121 : vector<32x256xf32>
    %cst_50 = arith.constant 4.471500e-02 : f32
    %124 = vector.broadcast %cst_50 : f32 to vector<32x256xf32>
    %125 = arith.mulf %124, %121 : vector<32x256xf32>
    %126 = arith.mulf %125, %121 : vector<32x256xf32>
    %127 = arith.mulf %126, %121 : vector<32x256xf32>
    %128 = arith.addf %121, %127 : vector<32x256xf32>
    %cst_51 = arith.constant 0.797884583 : f32
    %129 = vector.broadcast %cst_51 : f32 to vector<32x256xf32>
    %130 = arith.mulf %129, %128 : vector<32x256xf32>
    %131 = math.tanh %130 : vector<32x256xf32>
    %cst_52 = arith.constant 1.000000e+00 : f32
    %132 = vector.broadcast %cst_52 : f32 to vector<32x256xf32>
    %133 = arith.addf %132, %131 : vector<32x256xf32>
    %134 = arith.mulf %123, %133 : vector<32x256xf32>
    %135 = arith.truncf %134 : vector<32x256xf32> to vector<32x256xbf16>
    %c0_53 = arith.constant 0 : index
    %c0_54 = arith.constant 0 : index
    %c0_55 = arith.constant 0 : index
    %136 = vector.load %arg14[%c0_53, %c0_54, %c0_55] : memref<1x256x128xbf16, #tpu.memory_space<vmem>>, vector<1x256x128xbf16>
    %137 = vector.shape_cast %136 : vector<1x256x128xbf16> to vector<256x128xbf16>
    %cst_56 = arith.constant dense<0.000000e+00> : vector<32x128xf32>
    %138 = tpu.matmul %135, %137, %cst_56 {dimension_numbers = #tpu.dot_dimension_numbers<[1], [0], [0], [1], [0, 0, 1, 1], [], []>} : vector<32x256xbf16>, vector<256x128xbf16>, vector<32x128xf32> -> vector<32x128xf32>
    %c0_57 = arith.constant 0 : index
    %c0_58 = arith.constant 0 : index
    %c0_59 = arith.constant 0 : index
    %139 = vector.load %arg15[%c0_57, %c0_58, %c0_59] : memref<1x1x128xf32, #tpu.memory_space<vmem>>, vector<1x1x128xf32>
    %140 = vector.shape_cast %139 : vector<1x1x128xf32> to vector<1x128xf32>
    %141 = vector.broadcast %140 : vector<1x128xf32> to vector<32x128xf32>
    %142 = arith.addf %138, %141 : vector<32x128xf32>
    %143 = arith.addf %113, %142 : vector<32x128xf32>
    %c0_60 = arith.constant 0 : index
    %c0_61 = arith.constant 0 : index
    %c0_62 = arith.constant 0 : index
    %144 = vector.load %arg16[%c0_60, %c0_61, %c0_62] : memref<1x1x128xf32, #tpu.memory_space<vmem>>, vector<1x1x128xf32>
    %145 = vector.shape_cast %144 : vector<1x1x128xf32> to vector<1x128xf32>
    %c0_63 = arith.constant 0 : index
    %c0_64 = arith.constant 0 : index
    %c0_65 = arith.constant 0 : index
    %146 = vector.load %arg17[%c0_63, %c0_64, %c0_65] : memref<1x1x128xf32, #tpu.memory_space<vmem>>, vector<1x1x128xf32>
    %147 = vector.shape_cast %146 : vector<1x1x128xf32> to vector<1x128xf32>
    %cst_66 = arith.constant dense<0.000000e+00> : vector<32xf32>
    %148 = vector.multi_reduction <add>, %143, %cst_66 [1] : vector<32x128xf32> to vector<32xf32>
    %149 = vector.shape_cast %148 : vector<32xf32> to vector<32x1xf32>
    %cst_67 = arith.constant 1.280000e+02 : f32
    %150 = vector.broadcast %cst_67 : f32 to vector<32x1xf32>
    %151 = arith.divf %149, %150 : vector<32x1xf32>
    %152 = vector.broadcast %151 : vector<32x1xf32> to vector<32x128xf32>
    %153 = arith.subf %143, %152 : vector<32x128xf32>
    %154 = arith.mulf %153, %153 : vector<32x128xf32>
    %cst_68 = arith.constant dense<0.000000e+00> : vector<32xf32>
    %155 = vector.multi_reduction <add>, %154, %cst_68 [1] : vector<32x128xf32> to vector<32xf32>
    %156 = vector.shape_cast %155 : vector<32xf32> to vector<32x1xf32>
    %cst_69 = arith.constant 1.280000e+02 : f32
    %157 = vector.broadcast %cst_69 : f32 to vector<32x1xf32>
    %158 = arith.divf %156, %157 : vector<32x1xf32>
    %159 = vector.broadcast %151 : vector<32x1xf32> to vector<32x128xf32>
    %160 = arith.subf %143, %159 : vector<32x128xf32>
    %cst_70 = arith.constant 9.99999996E-13 : f32
    %161 = vector.broadcast %cst_70 : f32 to vector<32x1xf32>
    %162 = arith.addf %158, %161 : vector<32x1xf32>
    %163 = math.rsqrt %162 : vector<32x1xf32>
    %164 = vector.broadcast %163 : vector<32x1xf32> to vector<32x128xf32>
    %165 = arith.mulf %160, %164 : vector<32x128xf32>
    %166 = vector.broadcast %145 : vector<1x128xf32> to vector<32x128xf32>
    %167 = arith.mulf %165, %166 : vector<32x128xf32>
    %168 = vector.broadcast %147 : vector<1x128xf32> to vector<32x128xf32>
    %169 = arith.addf %167, %168 : vector<32x128xf32>
    %c0_71 = arith.constant 0 : index
    %c0_72 = arith.constant 0 : index
    %170 = vector.load %arg23[%c0_71, %c0_72] : memref<32x128xf32, #tpu.memory_space<vmem>>, vector<32x128xf32>
    tpu.vector_store %arg23[%c0_71, %c0_72], %169 {strides = array<i32>} : memref<32x128xf32, #tpu.memory_space<vmem>>, vector<32x128xf32>,
    %c1_i32 = arith.constant 1 : i32
    %171 = arith.cmpi eq, %arg0, %c1_i32 : i32
    %172 = arith.extui %171 : i1 to i32
    %c0_i32_73 = arith.constant 0 : i32
    %173 = arith.cmpi ne, %172, %c0_i32_73 : i32
    scf.if %173 {
      %174 = arith.truncf %169 : vector<32x128xf32> to vector<32x128xbf16>
      %c0_74 = arith.constant 0 : index
      %c0_75 = arith.constant 0 : index
      %175 = vector.load %arg18[%c0_74, %c0_75] : memref<128x8xbf16, #tpu.memory_space<vmem>>, vector<128x8xbf16>
      %cst_76 = arith.constant dense<0.000000e+00> : vector<32x8xf32>
      %176 = tpu.matmul %174, %175, %cst_76 {dimension_numbers = #tpu.dot_dimension_numbers<[1], [0], [0], [1], [0, 0, 1, 1], [], []>} : vector<32x128xbf16>, vector<128x8xbf16>, vector<32x8xf32> -> vector<32x8xf32>
      %c0_77 = arith.constant 0 : index
      %c0_78 = arith.constant 0 : index
      %177 = vector.load %arg19[%c0_77, %c0_78] : memref<1x8xf32, #tpu.memory_space<vmem>>, vector<1x8xf32>
      %178 = vector.broadcast %177 : vector<1x8xf32> to vector<32x8xf32>
      %179 = arith.addf %176, %178 : vector<32x8xf32>
      %c0_79 = arith.constant 0 : index
      %c0_80 = arith.constant 0 : index
      %180 = vector.load %arg21[%c0_79, %c0_80] : memref<32x8xf32, #tpu.memory_space<vmem>>, vector<32x8xf32>
      tpu.vector_store %arg21[%c0_79, %c0_80], %179 {strides = array<i32>} : memref<32x8xf32, #tpu.memory_space<vmem>>, vector<32x8xf32>,
      %c0_81 = arith.constant 0 : index
      %c0_82 = arith.constant 0 : index
      %181 = vector.load %arg20[%c0_81, %c0_82] : memref<32x8xf32, #tpu.memory_space<vmem>>, vector<32x8xf32>
      %c0_83 = arith.constant 0 : index
      %c0_84 = arith.constant 0 : index
      %182 = vector.load %arg3[%c0_83, %c0_84] : memref<32x1xf32, #tpu.memory_space<vmem>>, vector<32x1xf32>
      %cst_85 = arith.constant 0.000000e+00 : f32
      %183 = vector.broadcast %cst_85 : f32 to vector<32x8xf32>
      %184 = arith.maximumf %179, %183 : vector<32x8xf32>
      %185 = arith.mulf %179, %181 : vector<32x8xf32>
      %186 = arith.subf %184, %185 : vector<32x8xf32>
      %187 = math.absf %179 : vector<32x8xf32>
      %cst_86 = arith.constant 0.000000e+00 : f32
      %188 = vector.broadcast %cst_86 : f32 to vector<32x8xf32>
      %189 = arith.subf %188, %187 : vector<32x8xf32>
      %190 = math.exp %189 : vector<32x8xf32>
      %cst_87 = arith.constant 1.000000e+00 : f32
      %191 = vector.broadcast %cst_87 : f32 to vector<32x8xf32>
      %192 = arith.addf %191, %190 : vector<32x8xf32>
      %193 = math.log %192 : vector<32x8xf32>
      %194 = arith.addf %186, %193 : vector<32x8xf32>
      %195 = vector.broadcast %182 : vector<32x1xf32> to vector<32x8xf32>
      %196 = arith.mulf %194, %195 : vector<32x8xf32>
      %cst_88 = arith.constant dense<0.000000e+00> : vector<8xf32>
      %197 = vector.multi_reduction <add>, %196, %cst_88 [0] : vector<32x8xf32> to vector<8xf32>
      %198 = vector.shape_cast %197 : vector<8xf32> to vector<1x8xf32>
      %cst_89 = arith.constant dense<0.000000e+00> : vector<1xf32>
      %199 = vector.multi_reduction <add>, %198, %cst_89 [1] : vector<1x8xf32> to vector<1xf32>
      %200 = vector.shape_cast %199 : vector<1xf32> to vector<1x1xf32>
      %cst_90 = arith.constant dense<0.000000e+00> : vector<1xf32>
      %201 = vector.multi_reduction <add>, %182, %cst_90 [0] : vector<32x1xf32> to vector<1xf32>
      %202 = vector.shape_cast %201 : vector<1xf32> to vector<1x1xf32>
      %203 = tpu.reciprocal %202 {approx = true} : vector<1x1xf32> -> vector<1x1xf32>
      %204 = arith.mulf %200, %203 : vector<1x1xf32>
      %c0_91 = arith.constant 0 : index
      %c0_92 = arith.constant 0 : index
      %205 = vector.load %arg22[%c0_91, %c0_92] : memref<1x1xf32, #tpu.memory_space<vmem>>, vector<1x1xf32>
      tpu.vector_store %arg22[%c0_91, %c0_92], %204 {strides = array<i32>} : memref<1x1xf32, #tpu.memory_space<vmem>>, vector<1x1xf32>,
    } else {
    }
    return
  }
  func.func @transform_0(%arg0: i32) -> (i32, i32) {
    %c0_i32 = arith.constant 0 : i32
    %c0_i32_0 = arith.constant 0 : i32
    %c0_i32_1 = arith.constant 0 : i32
    return %c0_i32, %c0_i32_0 : i32, i32
  }
  func.func @transform_1(%arg0: i32) -> (i32, i32) {
    %c0_i32 = arith.constant 0 : i32
    %c0_i32_0 = arith.constant 0 : i32
    %c0_i32_1 = arith.constant 0 : i32
    return %c0_i32, %c0_i32_0 : i32, i32
  }
  func.func @transform_2(%arg0: i32) -> (i32, i32) {
    %c0_i32 = arith.constant 0 : i32
    %c0_i32_0 = arith.constant 0 : i32
    %c0_i32_1 = arith.constant 0 : i32
    return %c0_i32, %c0_i32_0 : i32, i32
  }
  func.func @transform_3(%arg0: i32) -> (i32, i32) {
    %c0_i32 = arith.constant 0 : i32
    %c0_i32_0 = arith.constant 0 : i32
    %c0_i32_1 = arith.constant 0 : i32
    return %c0_i32, %c0_i32_0 : i32, i32
  }
  func.func @transform_4(%arg0: i32) -> (i32, i32) {
    %c0_i32 = arith.constant 0 : i32
    %c0_i32_0 = arith.constant 0 : i32
    %c0_i32_1 = arith.constant 0 : i32
    return %c0_i32, %c0_i32_0 : i32, i32
  }
  func.func @transform_5(%arg0: i32) -> (i32, i32, i32) {
    %c0_i32 = arith.constant 0 : i32
    %c0_i32_0 = arith.constant 0 : i32
    %c0_i32_1 = arith.constant 0 : i32
    return %arg0, %c0_i32, %c0_i32_0 : i32, i32, i32
  }
  func.func @transform_6(%arg0: i32) -> (i32, i32, i32) {
    %c0_i32 = arith.constant 0 : i32
    %c0_i32_0 = arith.constant 0 : i32
    %c0_i32_1 = arith.constant 0 : i32
    return %arg0, %c0_i32, %c0_i32_0 : i32, i32, i32
  }
  func.func @transform_7(%arg0: i32) -> (i32, i32, i32) {
    %c0_i32 = arith.constant 0 : i32
    %c0_i32_0 = arith.constant 0 : i32
    %c0_i32_1 = arith.constant 0 : i32
    return %arg0, %c0_i32, %c0_i32_0 : i32, i32, i32
  }
  func.func @transform_8(%arg0: i32) -> (i32, i32, i32) {
    %c0_i32 = arith.constant 0 : i32
    %c0_i32_0 = arith.constant 0 : i32
    %c0_i32_1 = arith.constant 0 : i32
    return %arg0, %c0_i32, %c0_i32_0 : i32, i32, i32
  }
  func.func @transform_9(%arg0: i32) -> (i32, i32, i32) {
    %c0_i32 = arith.constant 0 : i32
    %c0_i32_0 = arith.constant 0 : i32
    %c0_i32_1 = arith.constant 0 : i32
    return %arg0, %c0_i32, %c0_i32_0 : i32, i32, i32
  }
  func.func @transform_10(%arg0: i32) -> (i32, i32, i32) {
    %c0_i32 = arith.constant 0 : i32
    %c0_i32_0 = arith.constant 0 : i32
    %c0_i32_1 = arith.constant 0 : i32
    return %arg0, %c0_i32, %c0_i32_0 : i32, i32, i32
  }
  func.func @transform_11(%arg0: i32) -> (i32, i32, i32) {
    %c0_i32 = arith.constant 0 : i32
    %c0_i32_0 = arith.constant 0 : i32
    %c0_i32_1 = arith.constant 0 : i32
    return %arg0, %c0_i32, %c0_i32_0 : i32, i32, i32
  }
  func.func @transform_12(%arg0: i32) -> (i32, i32, i32) {
    %c0_i32 = arith.constant 0 : i32
    %c0_i32_0 = arith.constant 0 : i32
    %c0_i32_1 = arith.constant 0 : i32
    return %arg0, %c0_i32, %c0_i32_0 : i32, i32, i32
  }
  func.func @transform_13(%arg0: i32) -> (i32, i32, i32) {
    %c0_i32 = arith.constant 0 : i32
    %c0_i32_0 = arith.constant 0 : i32
    %c0_i32_1 = arith.constant 0 : i32
    return %arg0, %c0_i32, %c0_i32_0 : i32, i32, i32
  }
  func.func @transform_14(%arg0: i32) -> (i32, i32, i32) {
    %c0_i32 = arith.constant 0 : i32
    %c0_i32_0 = arith.constant 0 : i32
    %c0_i32_1 = arith.constant 0 : i32
    return %arg0, %c0_i32, %c0_i32_0 : i32, i32, i32
  }
  func.func @transform_15(%arg0: i32) -> (i32, i32, i32) {
    %c0_i32 = arith.constant 0 : i32
    %c0_i32_0 = arith.constant 0 : i32
    %c0_i32_1 = arith.constant 0 : i32
    return %arg0, %c0_i32, %c0_i32_0 : i32, i32, i32
  }
  func.func @transform_16(%arg0: i32) -> (i32, i32, i32) {
    %c0_i32 = arith.constant 0 : i32
    %c0_i32_0 = arith.constant 0 : i32
    %c0_i32_1 = arith.constant 0 : i32
    return %arg0, %c0_i32, %c0_i32_0 : i32, i32, i32
  }
  func.func @transform_17(%arg0: i32) -> (i32, i32) {
    %c0_i32 = arith.constant 0 : i32
    %c0_i32_0 = arith.constant 0 : i32
    %c0_i32_1 = arith.constant 0 : i32
    return %c0_i32, %c0_i32_0 : i32, i32
  }
  func.func @transform_18(%arg0: i32) -> (i32, i32) {
    %c0_i32 = arith.constant 0 : i32
    %c0_i32_0 = arith.constant 0 : i32
    %c0_i32_1 = arith.constant 0 : i32
    return %c0_i32, %c0_i32_0 : i32, i32
  }
  func.func @transform_19(%arg0: i32) -> (i32, i32) {
    %c0_i32 = arith.constant 0 : i32
    %c0_i32_0 = arith.constant 0 : i32
    %c0_i32_1 = arith.constant 0 : i32
    return %c0_i32, %c0_i32_0 : i32, i32
  }
  func.func @transform_20(%arg0: i32) -> (i32, i32) {
    %c0_i32 = arith.constant 0 : i32
    %c0_i32_0 = arith.constant 0 : i32
    %c0_i32_1 = arith.constant 0 : i32
    return %c0_i32, %c0_i32_0 : i32, i32
  }
  func.func @transform_21(%arg0: i32) -> (i32, i32) {
    %c0_i32 = arith.constant 0 : i32
    %c0_i32_0 = arith.constant 0 : i32
    %c0_i32_1 = arith.constant 0 : i32
    return %c0_i32, %c0_i32_0 : i32, i32
  }
}

</mosaic_0001>

<bundles_post_ra>
// kernel: uie_forward.1
= control target key start
LH: loop header
LB: loop body
LE: loop exit
PB: predicated region body
PF: predicated region fallthrough
CT: control target
= control target key end

     0   :  { %s5060_s0 = inlined_call_operand.vmem [shape: f32[32,128], index: 0, kind: input, shape index: {}]   ;;  %s5061_s1 = inlined_call_operand.vmem [shape: f32[2,16], index: 1, kind: input, shape index: {}]   ;;  %s5062_s2 = inlined_call_operand.vmem [shape: f32[32,1], index: 2, kind: input, shape index: {}]   ;;  %s5063_s3 = inlined_call_operand.hbm [shape: f32[1,128], index: 3, kind: input, shape index: {}]   ;;  %s5064_s4 = inlined_call_operand.hbm [shape: f32[1,128], index: 4, kind: input, shape index: {}]   ;;  %s5065_s5 = inlined_call_operand.vmem [shape: bf16[2,128,384], index: 5, kind: input, shape index: {}]   ;;  %s5066_s6 = inlined_call_operand.hbm [shape: f32[2,1,384], index: 6, kind: input, shape index: {}]   ;;  %s5067_s7 = inlined_call_operand.vmem [shape: bf16[2,128,128], index: 7, kind: input, shape index: {}]   ;;  %s5068_s8 = inlined_call_operand.hbm [shape: f32[2,1,128], index: 8, kind: input, shape index: {}]   ;;  %s5069_s9 = inlined_call_operand.hbm [shape: f32[2,1,128], index: 9, kind: input, shape index: {}]   ;;  %s5070_s10 = inlined_call_operand.hbm [shape: f32[2,1,128], index: 10, kind: input, shape index: {}]   ;;  %s5071_s11 = inlined_call_operand.vmem [shape: bf16[2,128,256], index: 11, kind: input, shape index: {}]   ;;  %s5072_s12 = inlined_call_operand.hbm [shape: f32[2,1,256], index: 12, kind: input, shape index: {}]   ;;  %s5073_s13 = inlined_call_operand.vmem [shape: bf16[2,256,128], index: 13, kind: input, shape index: {}]   ;;  %s5074_s14 = inlined_call_operand.hbm [shape: f32[2,1,128], index: 14, kind: input, shape index: {}]   ;;  %s5075_s15 = inlined_call_operand.hbm [shape: f32[2,1,128], index: 15, kind: input, shape index: {}]   ;;  %s5076_s16 = inlined_call_operand.hbm [shape: f32[2,1,128], index: 16, kind: input, shape index: {}]   ;;  %s5077_s17 = inlined_call_operand.vmem [shape: bf16[128,8], index: 17, kind: input, shape index: {}]   ;;  %s5078_s18 = inlined_call_operand.vmem [shape: f32[1,8], index: 18, kind: input, shape index: {}]   ;;  %s5079_s19 = inlined_call_operand.vmem [shape: f32[32,8], index: 19, kind: input, shape index: {}]   ;;  %s5080_s20 = inlined_call_operand.vmem [shape: f32[32,8], index: 20, kind: output, shape index: {0}]   ;;  %s5081_s21 = inlined_call_operand.hbm [shape: f32[1,1], index: 21, kind: output, shape index: {1}]  }
   0x1   :  { %5104 = sst [smem:[#allocation24_spill]] %s5060_s0 }
   0x2   :  { %5105 = sst [smem:[#allocation25_spill]] %s5061_s1 }
   0x3   :  { %5106 = sst [smem:[#allocation26_spill]] %s5062_s2 }
   0x4   :  { %5107 = sst [smem:[#allocation27_spill]] %s5063_s3 }
   0x5   :  { %5108 = sst [smem:[#allocation28_spill]] %s5064_s4 }
   0x6   :  { %5109 = sst [smem:[#allocation29_spill]] %s5065_s5 }
   0x7   :  { %5110 = sst [smem:[#allocation30_spill]] %s5066_s6 }
   0x8   :  { %5111 = sst [smem:[#allocation31_spill]] %s5067_s7 }
   0x9   :  { %5112 = sst [smem:[#allocation32_spill]] %s5068_s8 }
   0xa   :  { %5113 = sst [smem:[#allocation33_spill]] %s5069_s9 }
   0xb   :  { %5114 = sst [smem:[#allocation34_spill]] %s5070_s10 }
   0xc   :  { %5115 = sst [smem:[#allocation35_spill]] %s5073_s13 }
   0xd   :  { %5116 = sst [smem:[#allocation36_spill]] %s5077_s17 }
   0xe   :  { %5117 = sst [smem:[#allocation37_spill]] %s5078_s18 }
   0xf   :  { %5118 = sst [smem:[#allocation38_spill]] %s5079_s19 }
  0x10   :  { %5119 = sst [smem:[#allocation39_spill]] %s5080_s20 }
  0x11   :  { %5120 = sst [smem:[#allocation40_spill]] %s5081_s21 }
  0x12   :  { %27 = vsyncpa [#allocation4], 0 }
  0x13   :  { %28 = vsyncpa [#allocation7], 0 }
  0x14   :  { %29 = vsyncpa [#allocation5], 0  ;;  %s4249_s2 = smov 0   ;;  %s4251_s25 = smov 0  }
  0x15   :  { %s4253_s26 = smov 0   ;;  %s4255_s27 = smov 0  }
  0x16 LB: > { %5121 = sst [smem:[#allocation21_spill]] %s4116_s26  ;;  %s4268_s3 = sadd.s32 4294967295, %s4120_s27   ;;  %s4120_s27 = sphi %s4255_s27, %s5168_s27   ;;  %s4116_s26 = sphi %s4253_s26, %s5170_s26   ;;  %s4112_s25 = sphi %s4251_s25, %s5172_s25   ;;  %s4108_s2 = sphi %s4249_s2, %s5171_s2  }
  0x17   : > { %s4271_s28 = sadd.s32 1, %s4120_s27   ;;  %s173_s0 = sadd.s32 1, %s4116_s26 }
  0x18   : > { %5122 = sst [smem:[#allocation22_spill]] %s4271_s28  ;;  %s170_s29 = ssub.s32 %s4120_s27, %s4271_s28 }
  0x19   : > { %p171_p0 = scmp.eq.s32.totalorder %s170_s29, 0  ;;  %p180_p1 = scmp.ne.s32.totalorder %s4116_s26, %s4112_s25 }
  0x1a   : > { %p181_p2 = scmp.eq.s32.totalorder %s4120_s27, 0  ;;  %p186_p3 = scmp.ne.s32.totalorder %s4112_s25, %s4108_s2 }
  0x1b   : > { %s4281_s4 = scalar_select %p171_p0, %s4116_s26, %s173_s0  }
  0x1c   : > { %p4283_p4 = por %p181_p2, %p180_p1  ;;  %p5093_p5 = scmp.eq.s32.totalorder %s4268_s3, 0 }
  0x1d   : > { %5123 = sst [smem:[#allocation23_spill]] %s4281_s4  ;;  %p3140_p6 = scmp.ge.s32.totalorder %s4120_s27, 1 }
  0x1e   : > { %p562_p7 = scmp.lt.s32.totalorder %s4120_s27, 3  ;;  %p4292_p8 = por %p5093_p5, %p186_p3 }
  0x1f   : > { %s4122_s23 = smov [#allocation3]   ;;  %p3526_p12 = scmp.lt.s32.totalorder %s4120_s27, 2 }
  0x20   : > { %s5125_s5 = scalar_select %p4292_p8, 1, 0 }
  0x21   : > { %p4297_p10 = pnand %p3140_p6, %p562_p7  ;;  %s584_s1 = sshll.u32 %s4122_s23, 4  ;;  %s585_s1 = int_to_ptr.vmem [resolvable:$true] %s584_s1 }
  0x22   : > { %s4305_s24 = sand.u32 1, %s4116_s26   ;;  %s623_s29 = sand.u32 1, %s4120_s27  }
  0x23   : > { %s5126_s22 = scalar_select %p4297_p10, 1, 0 }
  0x24   : > { %p3492_p11 = pneg %p4297_p10  ;;  %p4316_p0 = pnand %p3526_p12, %p4283_p4 }
  0x25   : > { %s3460_s23 = smul.u32 3, %s4305_s24  ;;  %s5129_s21 = sld [smem:[#allocation27_spill]] }
  0x26   : > { %p4309_p13 = pnand %p3492_p11, %p5093_p5 }
  0x27   : > { %s5128_s0 = scalar_select %p4316_p0, 1, 0 }
  0x28   : > { %s5127_s2 = scalar_select %p4309_p13, 1, 0 }
  0x29   : > { %p5097_p2 = pneg %p4309_p13 }
  0x2b   : > { %s3752_s26 = scalar_lea.hbm %s5129_s21, 16 }
  0x2c   : > { %p3753_p1 = scmp.ne.s32.totalorder %s5129_s21, %s3752_s26  ;;  %p3759_p4 = scmp.lt.u32.totalorder %s3752_s26, %s5129_s21 }
  0x2e   : > { %p3755_p3 = pnand %p5097_p2, %p3753_p1 }
  0x30   : > { %p3756_p6 = pneg %p3755_p3 }
  0x32   : > { %p3761_p7 = pnand %p3759_p4, %p3756_p6 }
  0x34   : > { %3764 = shalt.err (!%p3761_p7)
}
  0x35   : > { %s3765_s17 = scalar_lea.vmem %s585_s1, 16  ;;  %s3772_s19 = scalar_lea.vmem %s585_s1, 32 }
  0x36   : > { %p3766_p11 = scmp.ne.s32.totalorder %s585_s1, %s3765_s17  ;;  %p3773_p5 = scmp.lt.s32.totalorder %s585_s1, %s585_s1 }
  0x37   : > { %p3774_p8 = scmp.lt.s32.totalorder %s3772_s19, %s3765_s17 }
  0x38   : > { %p3768_p12 = pnand %p3766_p11, %p5097_p2 }
  0x39   : > { %p3775_p10 = por %p3774_p8, %p3773_p5 }
  0x3a   : > { %p3769_p9 = pneg %p3768_p12 }
  0x3c   : > { %p3776_p0 = pnand %p3775_p10, %p3769_p9 }
  0x3e   : > { %3779 = shalt.err (!%p3776_p0)
}
  0x3f   : > { %3495 = dma.hbm_to_vmem [thread:$0]  (!%p4309_p13), %s5129_s21, 16, %s585_s1, [#allocation4]  }
  0x40   : > { %s3461_s26 = smul.u32 48, %s4120_s27  ;;  %s627_s28 = scalar_lea.vmem [#allocation8], %s3460_s23 }
  0x41   : > { %s635_s4 = sshll.u32 %s627_s28, 4  ;;  %s5130_s6 = sld [smem:[#allocation30_spill]]  ;;  %s4344_s4 = int_to_ptr.vmem [resolvable:$true] %s635_s4 }
  0x42   : > { %s4352_s19 = sshll.u32 %s4120_s27, 4  ;;  %s4354_s20 = scalar_lea.sflag [#allocation4], %s623_s29 }
  0x43   : > { %p5131_p8 = scmp.ne.s32.totalorder %s5128_s0, 0 }
  0x45   : > { %p4360_p9 = pneg %p5131_p8 }
  0x47   : > { %s4349_s17 = scalar_lea.hbm %s5130_s6, %s3461_s26  ;;  %s3785_s26 = scalar_lea.hbm %s5130_s6, 96 }
  0x48   : > { %s3780_s18 = scalar_lea.hbm %s4349_s17, 48  ;;  %p3786_p1 = scmp.lt.u32.totalorder %s4349_s17, %s5130_s6 }
  0x49   : > { %p3781_p5 = scmp.ne.s32.totalorder %s4349_s17, %s3780_s18  ;;  %p3787_p3 = scmp.lt.u32.totalorder %s3785_s26, %s3780_s18 }
  0x4a   : > { %s5132_s1 = scalar_select %p4360_p9, 1, 0 }
  0x4b   : > { %p3783_p10 = pnand %p4360_p9, %p3781_p5  ;;  %p3788_p6 = por %p3787_p3, %p3786_p1 }
  0x4c   : > { %p3789_p4 = scmp.lt.u32.totalorder %s3780_s18, %s4349_s17 }
  0x4d   : > { %p3784_p0 = pneg %p3783_p10 }
  0x4e   : > { %p3790_p7 = por %p3789_p4, %p3788_p6 }
  0x50   : > { %p3791_p11 = pnand %p3790_p7, %p3784_p0 }
  0x52   : > { %3794 = shalt.err (!%p3791_p11)
}
  0x53   : > { %s3795_s29 = scalar_lea.vmem %s4344_s4, 48  ;;  %s4123_s13 = smov [#allocation8]  }
  0x54   : > { %p3796_p12 = scmp.ne.s32.totalorder %s4344_s4, %s3795_s29  ;;  %s3800_s23 = sshll.u32 %s4123_s13, 4  ;;  %s3801_s23 = int_to_ptr.vmem [resolvable:$false] %s3800_s23 }
  0x55   : > { %s3802_s28 = scalar_lea.vmem %s3801_s23, 96  ;;  %p3803_p2 = scmp.lt.s32.totalorder %s4344_s4, %s3801_s23 }
  0x56   : > { %p3798_p5 = pnand %p3796_p12, %p4360_p9  ;;  %p3804_p13 = scmp.lt.s32.totalorder %s3802_s28, %s3795_s29 }
  0x58   : > { %p3799_p10 = pneg %p3798_p5  ;;  %p3805_p1 = por %p3804_p13, %p3803_p2 }
  0x5a   : > { %p3806_p3 = pnand %p3805_p1, %p3799_p10 }
  0x5c   : > { %3809 = shalt.err (!%p3806_p3)
}
  0x5d   : > { %3502 = dma.hbm_to_vmem [thread:$0]  (!%p5131_p8), %s4349_s17, 48, %s4344_s4, %s4354_s20  }
  0x5e   : > { %s5133_s8 = sld [smem:[#allocation32_spill]]  ;;  %s653_s29 = scalar_lea.vmem [#allocation9], %s4305_s24 }
  0x5f   : > { %s660_s13 = sshll.u32 %s653_s29, 4  ;;  %s661_s13 = int_to_ptr.vmem [resolvable:$true] %s660_s13 }
  0x64   : > { %s4388_s30 = scalar_lea.hbm %s5133_s8, %s4352_s19  ;;  %s3815_s4 = scalar_lea.hbm %s5133_s8, 32 }
  0x65   : > { %s3810_s23 = scalar_lea.hbm %s4388_s30, 16  ;;  %p3816_p6 = scmp.lt.u32.totalorder %s4388_s30, %s5133_s8 }
  0x66   : > { %p3811_p13 = scmp.ne.s32.totalorder %s4388_s30, %s3810_s23  ;;  %p3817_p4 = scmp.lt.u32.totalorder %s3815_s4, %s3810_s23 }
  0x67   : > { %p3819_p11 = scmp.lt.u32.totalorder %s3810_s23, %s4388_s30 }
  0x68   : > { %p3813_p2 = pnand %p3811_p13, %p4360_p9  ;;  %p3818_p7 = por %p3817_p4, %p3816_p6 }
  0x6a   : > { %p3814_p0 = pneg %p3813_p2  ;;  %p3820_p12 = por %p3819_p11, %p3818_p7 }
  0x6c   : > { %p3821_p5 = pnand %p3820_p12, %p3814_p0 }
  0x6e   : > { %3824 = shalt.err (!%p3821_p5)
}
  0x6f   : > { %s3825_s26 = scalar_lea.vmem %s661_s13, 16  ;;  %s4124_s29 = smov [#allocation9]  }
  0x70   : > { %p3826_p10 = scmp.ne.s32.totalorder %s661_s13, %s3825_s26  ;;  %s3830_s21 = sshll.u32 %s4124_s29, 4  ;;  %s3831_s21 = int_to_ptr.vmem [resolvable:$false] %s3830_s21 }
  0x71   : > { %s3832_s6 = scalar_lea.vmem %s3831_s21, 32  ;;  %p3833_p13 = scmp.lt.s32.totalorder %s661_s13, %s3831_s21 }
  0x72   : > { %p3828_p1 = pnand %p3826_p10, %p4360_p9  ;;  %p3834_p2 = scmp.lt.s32.totalorder %s3832_s6, %s3825_s26 }
  0x74   : > { %p3829_p3 = pneg %p3828_p1  ;;  %p3835_p8 = por %p3834_p2, %p3833_p13 }
  0x76   : > { %p3836_p4 = pnand %p3835_p8, %p3829_p3 }
  0x78   : > { %3839 = shalt.err (!%p3836_p4)
}
  0x79   : > { %p5134_p6 = scmp.ne.s32.totalorder %s5128_s0, 0  ;;  %s5135_s9 = sld [smem:[#allocation33_spill]] }
  0x7a   : > { %s670_s21 = scalar_lea.vmem [#allocation10], %s4305_s24 }
  0x7b   : > { %3505 = dma.hbm_to_vmem [thread:$0]  (!%p5134_p6), %s4388_s30, 16, %s661_s13, %s4354_s20  }
  0x7c   : > { %s677_s17 = sshll.u32 %s670_s21, 4  ;;  %s678_s17 = int_to_ptr.vmem [resolvable:$true] %s677_s17 }
  0x7f   : > { %s4413_s4 = scalar_lea.hbm %s5135_s9, %s4352_s19  ;;  %s3845_s30 = scalar_lea.hbm %s5135_s9, 32 }
  0x80   : > { %s3840_s18 = scalar_lea.hbm %s4413_s4, 16  ;;  %p3846_p11 = scmp.lt.u32.totalorder %s4413_s4, %s5135_s9 }
  0x81   : > { %p3841_p8 = scmp.ne.s32.totalorder %s4413_s4, %s3840_s18  ;;  %p3847_p12 = scmp.lt.u32.totalorder %s3845_s30, %s3840_s18 }
  0x82   : > { %p3849_p10 = scmp.lt.u32.totalorder %s3840_s18, %s4413_s4 }
  0x83   : > { %p3843_p0 = pnand %p3841_p8, %p4360_p9  ;;  %p3848_p5 = por %p3847_p12, %p3846_p11 }
  0x85   : > { %p3844_p7 = pneg %p3843_p0  ;;  %p3850_p1 = por %p3849_p10, %p3848_p5 }
  0x87   : > { %p3851_p3 = pnand %p3850_p1, %p3844_p7 }
  0x89   : > { %3854 = shalt.err (!%p3851_p3)
}
  0x8a   : > { %s3855_s23 = scalar_lea.vmem %s678_s17, 16  ;;  %s4125_s28 = smov [#allocation10]  }
  0x8b   : > { %p3856_p13 = scmp.ne.s32.totalorder %s678_s17, %s3855_s23  ;;  %s3860_s21 = sshll.u32 %s4125_s28, 4  ;;  %s3861_s21 = int_to_ptr.vmem [resolvable:$false] %s3860_s21 }
  0x8c   : > { %s3862_s26 = scalar_lea.vmem %s3861_s21, 32  ;;  %p3863_p8 = scmp.lt.s32.totalorder %s678_s17, %s3861_s21 }
  0x8d   : > { %p3858_p2 = pnand %p3856_p13, %p4360_p9  ;;  %p3864_p0 = scmp.lt.s32.totalorder %s3862_s26, %s3855_s23 }
  0x8f   : > { %p3859_p4 = pneg %p3858_p2  ;;  %p3865_p6 = por %p3864_p0, %p3863_p8 }
  0x91   : > { %p3866_p11 = pnand %p3865_p6, %p3859_p4 }
  0x93   : > { %3869 = shalt.err (!%p3866_p11)
}
  0x94   : > { %p5136_p12 = scmp.ne.s32.totalorder %s5128_s0, 0  ;;  %s5137_s10 = sld [smem:[#allocation34_spill]] }
  0x95   : > { %s687_s13 = scalar_lea.vmem [#allocation11], %s4305_s24 }
  0x96   : > { %3508 = dma.hbm_to_vmem [thread:$0]  (!%p5136_p12), %s4413_s4, 16, %s678_s17, %s4354_s20  }
  0x97   : > { %s694_s6 = sshll.u32 %s687_s13, 4  ;;  %s695_s6 = int_to_ptr.vmem [resolvable:$true] %s694_s6 }
  0x9a   : > { %s4438_s30 = scalar_lea.hbm %s5137_s10, %s4352_s19  ;;  %s3875_s17 = scalar_lea.hbm %s5137_s10, 32 }
  0x9b   : > { %s3870_s28 = scalar_lea.hbm %s4438_s30, 16  ;;  %p3876_p10 = scmp.lt.u32.totalorder %s4438_s30, %s5137_s10 }
  0x9c   : > { %p3871_p6 = scmp.ne.s32.totalorder %s4438_s30, %s3870_s28  ;;  %p3877_p1 = scmp.lt.u32.totalorder %s3875_s17, %s3870_s28 }
  0x9d   : > { %p3879_p13 = scmp.lt.u32.totalorder %s3870_s28, %s4438_s30 }
  0x9e   : > { %p3873_p7 = pnand %p3871_p6, %p4360_p9  ;;  %p3878_p3 = por %p3877_p1, %p3876_p10 }
  0xa0   : > { %p3874_p5 = pneg %p3873_p7  ;;  %p3880_p2 = por %p3879_p13, %p3878_p3 }
  0xa2   : > { %p3881_p4 = pnand %p3880_p2, %p3874_p5 }
  0xa4   : > { %3884 = shalt.err (!%p3881_p4)
}
  0xa5   : > { %s3885_s29 = scalar_lea.vmem %s695_s6, 16  ;;  %s4126_s13 = smov [#allocation11]  }
  0xa6   : > { %p3886_p8 = scmp.ne.s32.totalorder %s695_s6, %s3885_s29  ;;  %s3890_s23 = sshll.u32 %s4126_s13, 4  ;;  %s3891_s23 = int_to_ptr.vmem [resolvable:$false] %s3890_s23 }
  0xa7   : > { %s3892_s21 = scalar_lea.vmem %s3891_s23, 32  ;;  %p3893_p6 = scmp.lt.s32.totalorder %s695_s6, %s3891_s23 }
  0xa8   : > { %p3888_p0 = pnand %p3886_p8, %p4360_p9  ;;  %p3894_p7 = scmp.lt.s32.totalorder %s3892_s21, %s3885_s29 }
  0xaa   : > { %p3889_p11 = pneg %p3888_p0  ;;  %p3895_p12 = por %p3894_p7, %p3893_p6 }
  0xac   : > { %p3896_p1 = pnand %p3895_p12, %p3889_p11 }
  0xae   : > { %3899 = shalt.err (!%p3896_p1)
}
  0xaf   : > { %p5138_p10 = scmp.ne.s32.totalorder %s5128_s0, 0  ;;  %s3264_s28 = sshll.u32 %s4120_s27, 5 }
  0xb0   : > { %s4464_s26 = scalar_lea.hbm %s5072_s12, %s3264_s28  ;;  %s5139_s18 = sshll.u32 %s4305_s24, 1 }
  0xb1   : > { %3511 = dma.hbm_to_vmem [thread:$0]  (!%p5138_p10), %s4438_s30, 16, %s695_s6, %s4354_s20  }
  0xb2   : > { %s713_s23 = scalar_lea.vmem [#allocation12], %s5139_s18  ;;  %s3900_s13 = scalar_lea.hbm %s4464_s26, 32 }
  0xb3   : > { %s721_s29 = sshll.u32 %s713_s23, 4  ;;  %p3901_p12 = scmp.ne.s32.totalorder %s4464_s26, %s3900_s13  ;;  %s722_s29 = int_to_ptr.vmem [resolvable:$true] %s721_s29 }
  0xb4   : > { %s3905_s6 = scalar_lea.hbm %s5072_s12, 64  ;;  %p3906_p13 = scmp.lt.u32.totalorder %s4464_s26, %s5072_s12 }
  0xb5   : > { %p3903_p5 = pnand %p3901_p12, %p4360_p9  ;;  %p3907_p2 = scmp.lt.u32.totalorder %s3905_s6, %s3900_s13 }
  0xb6   : > { %p3909_p8 = scmp.lt.u32.totalorder %s3900_s13, %s4464_s26 }
  0xb7   : > { %p3904_p3 = pneg %p3903_p5  ;;  %p3908_p4 = por %p3907_p2, %p3906_p13 }
  0xb9   : > { %p3910_p0 = por %p3909_p8, %p3908_p4 }
  0xbb   : > { %p3911_p11 = pnand %p3910_p0, %p3904_p3 }
  0xbd   : > { %3914 = shalt.err (!%p3911_p11)
}
  0xbe   : > { %s3915_s4 = scalar_lea.vmem %s722_s29, 32  ;;  %s4127_s17 = smov [#allocation12]  }
  0xbf   : > { %p3916_p6 = scmp.ne.s32.totalorder %s722_s29, %s3915_s4  ;;  %s3920_s18 = sshll.u32 %s4127_s17, 4  ;;  %s3921_s18 = int_to_ptr.vmem [resolvable:$false] %s3920_s18 }
  0xc0   : > { %s3922_s23 = scalar_lea.vmem %s3921_s18, 64  ;;  %p3923_p12 = scmp.lt.s32.totalorder %s722_s29, %s3921_s18 }
  0xc1   : > { %p3918_p7 = pnand %p3916_p6, %p4360_p9  ;;  %p3924_p5 = scmp.lt.s32.totalorder %s3922_s23, %s3915_s4 }
  0xc3   : > { %p3919_p1 = pneg %p3918_p7  ;;  %p3925_p10 = por %p3924_p5, %p3923_p12 }
  0xc5   : > { %p3926_p2 = pnand %p3925_p10, %p3919_p1 }
  0xc7   : > { %3929 = shalt.err (!%p3926_p2)
}
  0xc8   : > { %p5140_p13 = scmp.ne.s32.totalorder %s5128_s0, 0  ;;  %s4490_s27 = scalar_lea.hbm %s5074_s14, %s4352_s19 }
  0xc9   : > { %s739_s6 = scalar_lea.vmem [#allocation13], %s4305_s24  ;;  %s3930_s28 = scalar_lea.hbm %s4490_s27, 16 }
  0xca   : > { %3514 = dma.hbm_to_vmem [thread:$0]  (!%p5140_p13), %s4464_s26, 32, %s722_s29, %s4354_s20  }
  0xcb   : > { %s746_s21 = sshll.u32 %s739_s6, 4  ;;  %p3931_p10 = scmp.ne.s32.totalorder %s4490_s27, %s3930_s28  ;;  %s747_s21 = int_to_ptr.vmem [resolvable:$true] %s746_s21 }
  0xcc   : > { %s3935_s26 = scalar_lea.hbm %s5074_s14, 32  ;;  %p3936_p8 = scmp.lt.u32.totalorder %s4490_s27, %s5074_s14 }
  0xcd   : > { %p3933_p3 = pnand %p3931_p10, %p4360_p9  ;;  %p3937_p0 = scmp.lt.u32.totalorder %s3935_s26, %s3930_s28 }
  0xce   : > { %p3939_p6 = scmp.lt.u32.totalorder %s3930_s28, %s4490_s27 }
  0xcf   : > { %p3934_p4 = pneg %p3933_p3  ;;  %p3938_p11 = por %p3937_p0, %p3936_p8 }
  0xd1   : > { %p3940_p7 = por %p3939_p6, %p3938_p11 }
  0xd3   : > { %p3941_p1 = pnand %p3940_p7, %p3934_p4 }
  0xd5   : > { %3944 = shalt.err (!%p3941_p1)
}
  0xd6   : > { %s3945_s23 = scalar_lea.vmem %s747_s21, 16  ;;  %s4128_s13 = smov [#allocation13]  }
  0xd7   : > { %p3946_p12 = scmp.ne.s32.totalorder %s747_s21, %s3945_s23  ;;  %s3950_s30 = sshll.u32 %s4128_s13, 4  ;;  %s3951_s30 = int_to_ptr.vmem [resolvable:$false] %s3950_s30 }
  0xd8   : > { %s3952_s6 = scalar_lea.vmem %s3951_s30, 32  ;;  %p3953_p10 = scmp.lt.s32.totalorder %s747_s21, %s3951_s30 }
  0xd9   : > { %p3948_p5 = pnand %p3946_p12, %p4360_p9  ;;  %p3954_p3 = scmp.lt.s32.totalorder %s3952_s6, %s3945_s23 }
  0xdb   : > { %p3949_p2 = pneg %p3948_p5  ;;  %p3955_p13 = por %p3954_p3, %p3953_p10 }
  0xdd   : > { %p3956_p0 = pnand %p3955_p13, %p3949_p2 }
  0xdf   : > { %3959 = shalt.err (!%p3956_p0)
}
  0xe0   : > { %p5141_p8 = scmp.ne.s32.totalorder %s5128_s0, 0  ;;  %s4515_s17 = scalar_lea.hbm %s5075_s15, %s4352_s19 }
  0xe1   : > { %s756_s26 = scalar_lea.vmem [#allocation14], %s4305_s24  ;;  %s3960_s18 = scalar_lea.hbm %s4515_s17, 16 }
  0xe2   : > { %3517 = dma.hbm_to_vmem [thread:$0]  (!%p5141_p8), %s4490_s27, 16, %s747_s21, %s4354_s20  }
  0xe3   : > { %s763_s29 = sshll.u32 %s756_s26, 4  ;;  %p3961_p13 = scmp.ne.s32.totalorder %s4515_s17, %s3960_s18  ;;  %s764_s29 = int_to_ptr.vmem [resolvable:$true] %s763_s29 }
  0xe4   : > { %s3965_s27 = scalar_lea.hbm %s5075_s15, 32  ;;  %p3966_p6 = scmp.lt.u32.totalorder %s4515_s17, %s5075_s15 }
  0xe5   : > { %p3963_p4 = pnand %p3961_p13, %p4360_p9  ;;  %p3967_p7 = scmp.lt.u32.totalorder %s3965_s27, %s3960_s18 }
  0xe6   : > { %p3969_p12 = scmp.lt.u32.totalorder %s3960_s18, %s4515_s17 }
  0xe7   : > { %p3964_p11 = pneg %p3963_p4  ;;  %p3968_p1 = por %p3967_p7, %p3966_p6 }
  0xe9   : > { %p3970_p5 = por %p3969_p12, %p3968_p1 }
  0xeb   : > { %p3971_p2 = pnand %p3970_p5, %p3964_p11 }
  0xed   : > { %3974 = shalt.err (!%p3971_p2)
}
  0xee   : > { %s3975_s6 = scalar_lea.vmem %s764_s29, 16  ;;  %s4129_s28 = smov [#allocation14]  }
  0xef   : > { %p3976_p10 = scmp.ne.s32.totalorder %s764_s29, %s3975_s6  ;;  %s3980_s4 = sshll.u32 %s4129_s28, 4  ;;  %s3981_s4 = int_to_ptr.vmem [resolvable:$false] %s3980_s4 }
  0xf0   : > { %s3982_s26 = scalar_lea.vmem %s3981_s4, 32  ;;  %p3983_p13 = scmp.lt.s32.totalorder %s764_s29, %s3981_s4 }
  0xf1   : > { %p3978_p3 = pnand %p3976_p10, %p4360_p9  ;;  %p3984_p4 = scmp.lt.s32.totalorder %s3982_s26, %s3975_s6 }
  0xf3   : > { %p3979_p0 = pneg %p3978_p3  ;;  %p3985_p8 = por %p3984_p4, %p3983_p13 }
  0xf5   : > { %p3986_p6 = pnand %p3985_p8, %p3979_p0 }
  0xf7   : > { %3989 = shalt.err (!%p3986_p6)
}
  0xf8   : > { %p5142_p7 = scmp.ne.s32.totalorder %s5128_s0, 0  ;;  %s4130_s18 = smov [#allocation6]  }
  0xf9   : > { %s595_s23 = sshll.u32 %s4130_s18, 4  ;;  %s4540_s21 = scalar_lea.hbm %s5076_s16, %s4352_s19  ;;  %s596_s23 = int_to_ptr.vmem [resolvable:$true] %s595_s23 }
  0xfa   : > { %3520 = dma.hbm_to_vmem [thread:$0]  (!%p5142_p7), %s4515_s17, 16, %s764_s29, %s4354_s20  }
  0xfb   : > { %s5143_s28 = sld [smem:[#allocation28_spill]]  ;;  %p5144_p11 = scmp.ne.s32.totalorder %s5127_s2, 0 }
  0xfd   : > { %p5145_p1 = pneg %p5144_p11 }
 0x101   : > { %s3990_s4 = scalar_lea.hbm %s5143_s28, 16 }
 0x102   : > { %p3991_p8 = scmp.ne.s32.totalorder %s5143_s28, %s3990_s4  ;;  %p3997_p2 = scmp.lt.u32.totalorder %s3990_s4, %s5143_s28 }
 0x104   : > { %p3993_p12 = pnand %p3991_p8, %p5145_p1 }
 0x106   : > { %p3994_p5 = pneg %p3993_p12 }
 0x108   : > { %p3999_p10 = pnand %p3997_p2, %p3994_p5 }
 0x10a   : > { %4002 = shalt.err (!%p3999_p10)
}
 0x10b   : > { %s4003_s19 = scalar_lea.vmem %s596_s23, 16  ;;  %p5146_p0 = pmov %p5145_p1 }
 0x10c   : > { %p4004_p3 = scmp.ne.s32.totalorder %s596_s23, %s4003_s19  ;;  %s4010_s18 = scalar_lea.vmem %s596_s23, 32 }
 0x10d   : > { %p4011_p6 = scmp.lt.s32.totalorder %s596_s23, %s596_s23  ;;  %p4012_p7 = scmp.lt.s32.totalorder %s4010_s18, %s4003_s19 }
 0x10e   : > { %p4006_p13 = pnand %p4004_p3, %p5146_p0 }
 0x10f   : > { %p4013_p9 = por %p4012_p7, %p4011_p6 }
 0x110   : > { %p4007_p4 = pneg %p4006_p13 }
 0x112   : > { %p4014_p1 = pnand %p4013_p9, %p4007_p4 }
 0x114   : > { %4017 = shalt.err (!%p4014_p1)
}
 0x115   : > { %3498 = dma.hbm_to_vmem [thread:$0]  (!%p5144_p11), %s5143_s28, 16, %s596_s23, [#allocation7]  }
 0x116   : > { %s773_s27 = scalar_lea.vmem [#allocation15], %s4305_s24  ;;  %s4018_s6 = scalar_lea.hbm %s4540_s21, 16 }
 0x117   : > { %s780_s30 = sshll.u32 %s773_s27, 4  ;;  %p4019_p8 = scmp.ne.s32.totalorder %s4540_s21, %s4018_s6  ;;  %s781_s30 = int_to_ptr.vmem [resolvable:$true] %s780_s30 }
 0x118   : > { %p5147_p7 = scmp.ne.s32.totalorder %s5132_s1, 0  ;;  %s4023_s26 = scalar_lea.hbm %s5076_s16, 32 }
 0x119   : > { %p4024_p5 = scmp.lt.u32.totalorder %s4540_s21, %s5076_s16  ;;  %p4025_p2 = scmp.lt.u32.totalorder %s4023_s26, %s4018_s6 }
 0x11a   : > { %p4021_p9 = pnand %p4019_p8, %p5147_p7  ;;  %p4027_p3 = scmp.lt.u32.totalorder %s4018_s6, %s4540_s21 }
 0x11b   : > { %p4026_p10 = por %p4025_p2, %p4024_p5 }
 0x11c   : > { %p4022_p12 = pneg %p4021_p9 }
 0x11d   : > { %p4028_p11 = por %p4027_p3, %p4026_p10 }
 0x11f   : > { %p4029_p0 = pnand %p4028_p11, %p4022_p12 }
 0x121   : > { %4032 = shalt.err (!%p4029_p0)
}
 0x122   : > { %s4033_s24 = scalar_lea.vmem %s781_s30, 16  ;;  %s4131_s23 = smov [#allocation15]  }
 0x123   : > { %p4034_p13 = scmp.ne.s32.totalorder %s781_s30, %s4033_s24  ;;  %s4038_s19 = sshll.u32 %s4131_s23, 4  ;;  %s4039_s19 = int_to_ptr.vmem [resolvable:$false] %s4038_s19 }
 0x124   : > { %s4040_s18 = scalar_lea.vmem %s4039_s19, 32  ;;  %p4041_p1 = scmp.lt.s32.totalorder %s781_s30, %s4039_s19 }
 0x125   : > { %p4036_p4 = pnand %p4034_p13, %p5147_p7  ;;  %p4042_p8 = scmp.lt.s32.totalorder %s4040_s18, %s4033_s24 }
 0x127   : > { %p4037_p6 = pneg %p4036_p4  ;;  %p4043_p9 = por %p4042_p8, %p4041_p1 }
 0x129   : > { %p4044_p2 = pnand %p4043_p9, %p4037_p6 }
 0x12b   : > { %4047 = shalt.err (!%p4044_p2)
}
 0x12c   : > { %p5148_p5 = scmp.ne.s32.totalorder %s5128_s0, 0  ;;  %p5149_p12 = scmp.ne.s32.totalorder %s5126_s22, 0 }
 0x12d   : > { %p5150_p7 = scmp.eq.s32.totalorder (!%p5149_p12), %s4268_s3, 0 }
 0x12e   : > { %3523 = dma.hbm_to_vmem [thread:$0]  (!%p5148_p5), %s4540_s21, 16, %s781_s30, %s4354_s20  }
 0x12f   : > { %789 = sbr.rel (%p5149_p12) target bundleno = 4050 (0xfd2), region = 100 }
 0x136   : > { %4091 = dma.done.wait (%p5150_p7), [#allocation4], 16   ;;  %p5151_p10 = pmov %p5150_p7 }
 0x137   : > { %p5152_p3 = pmov %p5150_p7 }
 0x138   : > { %4093 = vsyncadd (%p5151_p10), [#allocation4], 4294967280 }
 0x139   : > { %4095 = dma.done.wait (%p5152_p3), [#allocation7], 16   ;;  %p5153_p11 = pmov %p5152_p3 }
 0x13a   : > { %s799_s0 = sand.u32 1, %s4268_s3   ;;  %s4593_s20 = sand.u32 1, %s4112_s25  }
 0x13b   : > { %4097 = vsyncadd (%p5153_p11), [#allocation7], 4294967280  ;;  %s3462_s22 = smul.u32 3, %s4593_s20  ;;  %s800_s1 = scalar_lea.sflag [#allocation4], %s799_s0 }
 0x13c   : > { %p5154_p0 = scmp.ne.s32.totalorder %s5125_s5, 0 }
 0x13d   : > { %s4596_s21 = scalar_lea.vmem [#allocation8], %s3462_s22 }
 0x13e   : > { %4099 = dma.done.wait (%p5154_p0), %s800_s1, 176  }
 0x13f   : > { %4101 = vsyncadd (%p5154_p0), %s800_s1, 4294967120  ;;  %s3157_s8 = sshll.u32 %s4593_s20, 1  ;;  %p963_p13 = scmp.lt.s32.totalorder %s4268_s3, 1 }
 0x140   : > { %s5155_s7 = sld [smem:[#allocation31_spill]]  ;;  %s5156_s29 = sld [smem:[#allocation29_spill]] }
 0x141   : > { %s964_s13 = scalar_select %p963_p13, %s4268_s3, 1 }
 0x142   : > { %s5157_s1 = sld [smem:[#allocation35_spill]]  ;;  %s811_s10 = scalar_lea.vmem [#allocation9], %s4593_s20 }
 0x143   : > { %s3463_s27 = smul.u32 192, %s964_s13  ;;  %s3265_s30 = sshll.u32 %s964_s13, 6 }
 0x144   : > { %s3266_s5 = sshll.u32 %s964_s13, 7  ;;  %s819_s6 = scalar_lea.vmem [#allocation10], %s4593_s20 }
 0x145   : > { %s4618_s18 = scalar_lea.vmem %s5071_s11, %s3266_s5  ;;  %s4628_s4 = scalar_lea.vmem [#allocation12], %s3157_s8 }
 0x146   : > { %s4608_s2 = scalar_lea.vmem %s5155_s7, %s3265_s30  ;;  %s4613_s24 = scalar_lea.vmem %s5156_s29, %s3463_s27 }
 0x147   : > { %s827_s30 = scalar_lea.vmem [#allocation11], %s4593_s20  ;;  %s844_s13 = scalar_lea.vmem [#allocation13], %s4593_s20 }
 0x148   : > { %s4623_s9 = scalar_lea.vmem %s5157_s1, %s3266_s5  ;;  %s852_s7 = scalar_lea.vmem [#allocation14], %s4593_s20 }
 0x149   : > { %s860_s26 = scalar_lea.vmem [#allocation15], %s4593_s20  ;;  %p5158_p4 = scmp.ne.s32.totalorder %s4268_s3, 0 }
 0x14a   : > { %s5159_s29 = sld [smem:[#allocation24_spill]] (!%p5158_p4)  ;;  %v3166_v33 = vld [vmem:[#allocation3] ss:$0 sm:$0xff] (!%p5158_p4)  ;;  %v3167_v35 = vld [vmem:[#allocation6] ss:$0 sm:$0xff] (!%p5158_p4) }
 0x14b   : > { %987 = sbr.rel (%p5158_p4) target bundleno = 657 (0x291), region = 144 }
 0x150   : > { %v988_v0 = vld [vmem:[%s5159_s29] sm:$0xff] (!%p5158_p4)  ;;  %v990_v1 = vld [vmem:[%s5159_s29 + $0x10] sm:$0xff] (!%p5158_p4)  ;;  %v989_v2 = vld [vmem:[%s5159_s29 + $0x8] sm:$0xff] (!%p5158_p4) }
 0x151   : > { %994 = vadd.xlane.f32.xlu0 (!%p5158_p4), %v988_v0  ;;  %998 = vadd.xlane.f32.xlu1 (!%p5158_p4), %v990_v1  ;;  %v991_v3 = vld [vmem:[%s5159_s29 + $0x18] sm:$0xff] (!%p5158_p4) }
 0x155   : > { %996 = vadd.xlane.f32.xlu0 %v989_v2  ;;  %1000 = vadd.xlane.f32.xlu1 %v991_v3 }
 0x1de   : > { %v995_v4 = vpop.xlane.xlu0 %994  ;;  %v999_v5 = vpop.xlane.xlu1 %998 }
 0x1df   : > { %v1003_v6 = vmul.f32 0.0078125, %v995_v4  ;;  %v1005_v7 = vmul.f32 0.0078125, %v999_v5 }
 0x1e1   : > { %v1007_v8 = vsub.f32 %v988_v0, %v1003_v6  ;;  %v1009_v9 = vsub.f32 %v990_v1, %v1005_v7 }
 0x1e2   : > { %v997_v10 = vpop.xlane.xlu0 %996  ;;  %v1001_v11 = vpop.xlane.xlu1 %1000 }
 0x1e3   : > { %v1004_v12 = vmul.f32 0.0078125, %v997_v10  ;;  %v1011_v13 = vmul.f32 %v1007_v8, %v1007_v8  ;;  %v1006_v14 = vmul.f32 0.0078125, %v1001_v11  ;;  %v1013_v17 = vmul.f32 %v1009_v9, %v1009_v9 }
 0x1e5   : > { %v1008_v15 = vsub.f32 %v989_v2, %v1004_v12  ;;  %1015 = vadd.xlane.f32.xlu0 %v1011_v13  ;;  %v1010_v16 = vsub.f32 %v991_v3, %v1006_v14 }
 0x1e7   : > { %v1012_v18 = vmul.f32 %v1008_v15, %v1008_v15  ;;  %v1014_v19 = vmul.f32 %v1010_v16, %v1010_v16 }
 0x1e9   : > { %1019 = vadd.xlane.f32.xlu0 %v1013_v17  ;;  %1017 = vadd.xlane.f32.xlu1 %v1012_v18 }
 0x1ed   : > { %1021 = vadd.xlane.f32.xlu1 %v1014_v19 }
 0x272   : > { %v1016_v20 = vpop.xlane.xlu0 %1015 }
 0x273   : > { %v1023_v21 = vmul.f32 0.0078125, %v1016_v20 }
 0x275   : > { %v1027_v22 = vadd.f32 1e-12, %v1023_v21 }
 0x276   : > { %v1018_v23 = vpop.xlane.xlu1 %1017  ;;  %v1020_v24 = vpop.xlane.xlu0 %1019 }
 0x277   : > { %3572 = vrsqrt.f32 %v1027_v22  ;;  %v1024_v25 = vmul.f32 0.0078125, %v1018_v23  ;;  %v1025_v26 = vmul.f32 0.0078125, %v1020_v24 }
 0x279   : > { %v1028_v27 = vadd.f32 1e-12, %v1024_v25  ;;  %v1029_v28 = vadd.f32 1e-12, %v1025_v26 }
 0x27a   : > { %v1022_v29 = vpop.xlane.xlu1 %1021 }
 0x27b   : > { %3574 = vrsqrt.f32 %v1028_v27  ;;  %v1026_v30 = vmul.f32 0.0078125, %v1022_v29 }
 0x27c   : > { %3576 = vrsqrt.f32 %v1029_v28 }
 0x27d   : > { %v1030_v31 = vadd.f32 1e-12, %v1026_v30 }
 0x27f   : > { %3578 = vrsqrt.f32 %v1030_v31 }
 0x281   : > { %v3573_v32 = vpop.eup %3572 }
 0x282   : > { %v1035_v34 = vmul.f32 %v3573_v32, %v1007_v8 }
 0x284   : > { %v1045_v36 = vmul.f32 %v3166_v33, %v1035_v34 }
 0x285   : > { %v3575_v37 = vpop.eup %3574 }
 0x286   : > { %v3577_v38 = vpop.eup %3576  ;;  %v1055_v39 = vadd.f32 %v3167_v35, %v1045_v36  ;;  %v1036_v40 = vmul.f32 %v3575_v37, %v1008_v15 }
 0x287   : > { %v1037_v41 = vmul.f32 %v3577_v38, %v1009_v9 }
 0x288   : > { %1059 = vst [vmem:[#allocation2] sm:$0xff] %v1055_v39  ;;  %v1046_v42 = vmul.f32 %v3166_v33, %v1036_v40 }
 0x289   : > { %v3579_v43 = vpop.eup %3578  ;;  %v1047_v44 = vmul.f32 %v3166_v33, %v1037_v41 }
 0x28a   : > { %v1056_v45 = vadd.f32 %v3167_v35, %v1046_v42  ;;  %v1038_v46 = vmul.f32 %v3579_v43, %v1010_v16 }
 0x28b   : > { %v1057_v47 = vadd.f32 %v3167_v35, %v1047_v44 }
 0x28c   : > { %1060 = vst [vmem:[#allocation2 + $0x8] sm:$0xff] %v1056_v45  ;;  %v1048_v48 = vmul.f32 %v3166_v33, %v1038_v46 }
 0x28d   : > { %1061 = vst [vmem:[#allocation2 + $0x10] sm:$0xff] %v1057_v47 }
 0x28e   : > { %v1058_v49 = vadd.f32 %v3167_v35, %v1048_v48 }
 0x290   : > { %1062 = vst [vmem:[#allocation2 + $0x18] sm:$0xff] %v1058_v49 }
 0x291 PF: > { %v3580_v50 = vld [vmem:[%s4613_s24 + $0x4] ss:$12 sps:$4 sm:$0xff]   ;;  %v3582_v51 = vld [vmem:[%s4613_s24] ss:$12 sps:$4 sm:$0xff]   ;;  %v4132_v52 = vmov 0   ;;  %v4133_v9 = vmov 0.0   ;;  %v1073_v10 = vlaneseq }
 0x292   : > { %1307 = vmatprep.mubr.bf16.mxu0 %v4132_v52  ;;  %1275 = vmatprep.subr.bf16.mxu0 %v3580_v50  ;;  %v3583_v53 = vld [vmem:[%s4613_s24 + $0x1c] ss:$12 sps:$4 sm:$0xff]   ;;  %v3585_v54 = vld [vmem:[%s4613_s24 + $0x18] ss:$12 sps:$4 sm:$0xff]   ;;  %v3586_v55 = vld [vmem:[%s4613_s24 + $0x34] ss:$12 sps:$4 sm:$0xff]  }
 0x293   : > { %1276 = vmatpush1.bf16.msra.mxu0 %v3582_v51  ;;  %v3588_v56 = vld [vmem:[%s4613_s24 + $0x30] ss:$12 sps:$4 sm:$0xff]   ;;  %v3589_v57 = vld [vmem:[%s4613_s24 + $0x4c] ss:$12 sps:$4 sm:$0xff]   ;;  %v4655_v58 = vld [vmem:[#allocation2] sm:$0xff]  ;;  %vm4134_vm0 = vmmov 0  }
 0x294   : > { %1277 = vmatprep.subr.bf16.mxu0 %v3583_v53  ;;  %v3591_v59 = vld [vmem:[%s4613_s24 + $0x48] ss:$12 sps:$4 sm:$0xff]   ;;  %v3592_v61 = vld [vmem:[%s4613_s24 + $0x64] ss:$12 sps:$4 sm:$0xff]   ;;  %v3594_v63 = vld [vmem:[%s4613_s24 + $0x60] ss:$12 sps:$4 sm:$0xff]  }
 0x295   : > { %v4658_v60 = vld [vmem:[#allocation2 + $0x8] sm:$0xff]  ;;  %v3597_v1 = vld [vmem:[%s4613_s24 + $0x78] ss:$12 sps:$4 sm:$0xff]   ;;  %v3598_v2 = vld [vmem:[%s4613_s24 + $0x94] ss:$12 sps:$4 sm:$0xff]   ;;  %v4683_v11 = vshrl.u32 %v1073_v10, 7 }
 0x296   : > { %v1096_v62 = vpack.c.bf16 %v4658_v60, %v4655_v58  ;;  %v3595_v0 = vld [vmem:[%s4613_s24 + $0x7c] ss:$12 sps:$4 sm:$0xff]   ;;  %v3601_v4 = vld [vmem:[%s4613_s24 + $0xac] ss:$12 sps:$4 sm:$0xff]   ;;  %v4670_v6 = vld [vmem:[#allocation2 + $0x10] sm:$0xff]  ;;  %vm1397_vm1 = vcmask 523264  }
 0x297   : > { %1278 = vmatpush1.bf16.msra.mxu0 %v3585_v54  ;;  %v3600_v3 = vld [vmem:[%s4613_s24 + $0x90] ss:$12 sps:$4 sm:$0xff]   ;;  %v3603_v5 = vld [vmem:[%s4613_s24 + $0xa8] ss:$12 sps:$4 sm:$0xff]   ;;  %v4686_v12 = vsub.s32 0, %v4683_v11  ;;  %v1138_v14 = vsub.s32 1, %v4683_v11 }
 0x298   : > { %1279 = vmatprep.subr.bf16.mxu0 %v3586_v55  ;;  %3360 = vmatprep.mubr.bf16.mxu1 %v1096_v62  ;;  %v4672_v7 = vld [vmem:[#allocation2 + $0x18] sm:$0xff]  ;;  %v4689_v13 = vld [vmem:[%s4596_s21] sm:$0x7]  ;;  %v3605_v40 = vld [vmem:[%s4613_s24 + $0x20] ss:$12 sps:$4 sm:$0xff]   ;;  %s5160_s27 = sld [smem:[#allocation25_spill]] }
 0x299   : > { %v4677_v8 = vpack.c.bf16 %v4672_v7, %v4670_v6  ;;  %v1135_v15 = vrot.slane %v4689_v13, %v4686_v12  ;;  %v1139_v17 = vrot.slane %v4689_v13, %v1138_v14  ;;  %v3604_v39 = vld [vmem:[%s4613_s24 + $0x8] ss:$12 sps:$4 sm:$0xff]   ;;  %v3606_v41 = vld [vmem:[%s4613_s24 + $0x38] ss:$12 sps:$4 sm:$0xff]   ;;  %v3607_v42 = vld [vmem:[%s4613_s24 + $0x50] ss:$12 sps:$4 sm:$0xff]  }
 0x29a   : > { %3344 = vmatprep.subr.bf16.mxu1 %v3604_v39  ;;  %v3608_v43 = vld [vmem:[%s4613_s24 + $0x68] ss:$12 sps:$4 sm:$0xff]   ;;  %v3609_v44 = vld [vmem:[%s4613_s24 + $0x80] ss:$12 sps:$4 sm:$0xff]   ;;  %v3610_v45 = vld [vmem:[%s4613_s24 + $0x98] ss:$12 sps:$4 sm:$0xff]  }
 0x29b   : > { %1280 = vmatpush1.bf16.msra.mxu0 %v3588_v56  ;;  %3345 = vmatpush3.bf16.msra.mxu1 %v3604_v39  ;;  %v3611_v46 = vld [vmem:[%s4613_s24 + $0xb0] ss:$12 sps:$4 sm:$0xff]   ;;  %v4135_v47 = vmov 1966171168   ;;  %vm1512_vm2 = vcmask 130048   ;;  %s4136_s24 = smov 64  }
 0x29c   : > { %1281 = vmatprep.subr.bf16.mxu0 %v3589_v57  ;;  %3346 = vmatprep.subr.bf16.mxu1 %v3605_v40  ;;  %v1071_v48 = vunpack.c.l.s4 %v4135_v47  ;;  %p3250_p6 = scmp.ne.s32.totalorder %s4268_s3, 1 }
 0x29d   : > { %vm2869_vm3 = vcmask (!%p3250_p6), 7168   ;;  %s5162_s17 = sld [smem:[#allocation26_spill]] (!%p3250_p6)  ;;  %vm2772_vm4 = vcmask (!%p3250_p6), 64512   ;;  %vm2885_vm5 = vcmask (!%p3250_p6), 0  }
 0x29e   : > { %v1072_v49 = vunpack.c.0.s8 %v1071_v48  ;;  %v1067_v50 = vld [vmem:[%s5160_s27] sm:$0x3] }
 0x29f   : > { %1282 = vmatpush1.bf16.msra.mxu0 %v3591_v59  ;;  %3347 = vmatpush3.bf16.msra.mxu1 %v3605_v40  ;;  %v1068_v51 = vsub.f32 1.0, %v1067_v50 }
 0x2a0   : > { %1283 = vmatprep.subr.bf16.mxu0 %v3592_v61  ;;  %3348 = vmatprep.subr.bf16.mxu1 %v3606_v41  ;;  %v1075_v53 = vsub.s32 %v1072_v49, %v4683_v11 }
 0x2a2   : > { %v1076_v54 = vrot.slane %v1068_v51, %v1075_v53 }
 0x2a3   : > { %1284 = vmatpush1.bf16.msra.mxu0 %v3594_v63  ;;  %3349 = vmatpush3.bf16.msra.mxu1 %v3606_v41 }
 0x2a4   : > { %1285 = vmatprep.subr.bf16.mxu0 %v3595_v0  ;;  %3350 = vmatprep.subr.bf16.mxu1 %v3607_v42  ;;  %v1084_v55 = vrot.slane %v1076_v54, %v1075_v53  ;;  %v1077_v57 = vcombine.high %v1076_v54, %v1076_v54 }
 0x2a6   : > { %v1094_v56 = vmul.f32 -10000.0, %v1084_v55  ;;  %v1091_v61 = vrot.slane %v1077_v57, %v1075_v53 }
 0x2a7   : > { %1286 = vmatpush1.bf16.msra.mxu0 %v3597_v1  ;;  %3351 = vmatpush3.bf16.msra.mxu1 %v3607_v42 }
 0x2a8   : > { %1287 = vmatprep.subr.bf16.mxu0 %v3598_v2  ;;  %3352 = vmatprep.subr.bf16.mxu1 %v3608_v43  ;;  %v4736_v59 = vrot.slane %v1094_v56, %v4686_v12 }
 0x2ab   : > { %1288 = vmatpush1.bf16.msra.mxu0 %v3600_v3  ;;  %3353 = vmatpush3.bf16.msra.mxu1 %v3608_v43 }
 0x2ac   : > { %1289 = vmatprep.subr.bf16.mxu0 %v3601_v4  ;;  %3354 = vmatprep.subr.bf16.mxu1 %v3609_v44 }
 0x2af   : > { %1290 = vmatpush1.bf16.msra.mxu0 %v3603_v5  ;;  %3355 = vmatpush3.bf16.msra.mxu1 %v3609_v44  ;;  %v1095_v5 = vmul.f32 -10000.0, %v1091_v61 }
 0x2b0   : > { %3364 = vmatprep.subr.bf16.mxu0 %v4133_v9  ;;  %3356 = vmatprep.subr.bf16.mxu1 %v3610_v45 }
 0x2b2   : > { %1308 = vmatmul.mubr.bf16.vlgmr.msra.gmra.mrb[0].mxu0 %v1096_v62 }
 0x2b3   : > { %1317 = vmatprep.mubr.bf16.mxu0 %v4132_v52  ;;  %3357 = vmatpush3.bf16.msra.mxu1 %v3610_v45 }
 0x2b4   : > { %3358 = vmatprep.subr.bf16.mxu1 %v3611_v46 }
 0x2b7   : > { %3359 = vmatpush3.bf16.msra.mxu1 %v3611_v46  ;;  %v1142_v46 = vsub.s32 2, %v4683_v11 }
 0x2b8   : > { %3376 = vmatprep.subr.bf16.mxu1 %v4133_v9 }
 0x2b9   : > { %v1143_v49 = vrot.slane %v4689_v13, %v1142_v46 }
 0x2ba   : > { %1318 = vmatmul.mubr.bf16.gmra.mrb[4].mxu0 %v4677_v8  ;;  %3361 = vmatmul.mubr.bf16.vlgmr.msra.gmra.mrb[0].mxu1 %v4677_v8 }
 0x2bb   : > { %3366 = vmatprep.mubr.msk.bf16.mxu0 %vm4134_vm0, %v4133_v9  ;;  %3378 = vmatprep.mubr.msk.bf16.mxu1 %vm4134_vm0, %v4133_v9 }
 0x385   : > { %v1309_v16 = vpop.f32.mrb[0].mxu0 }
 0x386   : > { %v1311_v18 = vpop.f32.mrb[1].mxu0  ;;  %v1310_v20 = vadd.f32 %v1309_v16, %v1135_v15 }
 0x387   : > { %v1313_v19 = vpop.f32.mrb[2].mxu0  ;;  %v1312_v23 = vadd.f32 %v1311_v18, %v1139_v17 }
 0x388   : > { %v1314_v21 = vadd.f32 %v1313_v19, %v1135_v15  ;;  %v1315_v22 = vpop.f32.mrb[3].mxu0 }
 0x389   : > { %v1316_v24 = vadd.f32 %v1315_v22, %v1139_v17 }
 0x38a   : > { %v4697_v25 = vpack.c.bf16 %v1314_v21, %v1310_v20 }
 0x38b   : > { %v4699_v26 = vpack.c.bf16 %v1316_v24, %v1312_v23 }
 0x38d   : > { %v1319_v27 = vpop.f32.mrb[4].mxu0  ;;  %v1402_v28 = vsel %vm1397_vm1, %v4699_v26, 0  ;;  %v3362_v47 = vpop.f32.mrb[0].mxu1 }
 0x38e   : > { %v1320_v29 = vadd.f32 %v1319_v27, %v1135_v15  ;;  %v1321_v30 = vpop.f32.mrb[5].mxu0  ;;  %3365 = vmatpush3.bf16.xpose.msra.mxu0 %v1402_v28  ;;  %v1362_v48 = vpop.f32.mrb[1].mxu1  ;;  %v1371_v56 = vadd.f32 %v3362_v47, %v1143_v49 }
 0x38f   : > { %v1322_v31 = vadd.f32 %v1321_v30, %v1139_v17  ;;  %v1323_v32 = vpop.f32.mrb[6].mxu0  ;;  %3370 = vmatprep.subr.bf16.mxu0 %v4133_v9  ;;  %v3363_v50 = vpop.f32.mrb[2].mxu1  ;;  %v1363_v53 = vadd.f32 %v1362_v48, %v1143_v49 }
 0x390   : > { %v1324_v33 = vadd.f32 %v1323_v32, %v1135_v15  ;;  %v1325_v34 = vpop.f32.mrb[7].mxu0  ;;  %v4742_v15 = vrot.slane %v1095_v5, %v4686_v12  ;;  %v1365_v51 = vpop.f32.mrb[3].mxu1  ;;  %v1374_v57 = vadd.f32 %v3363_v50, %v1143_v49 }
 0x391   : > { %v1326_v35 = vadd.f32 %v1325_v34, %v1139_v17  ;;  %v1366_v54 = vadd.f32 %v1365_v51, %v1143_v49 }
 0x392   : > { %v4704_v36 = vpack.c.bf16 %v1324_v33, %v1320_v29  ;;  %v4762_v13 = vpack.c.bf16 %v1374_v57, %v1371_v56 }
 0x393   : > { %v4706_v37 = vpack.c.bf16 %v1326_v35, %v1322_v31  ;;  %v4756_v55 = vpack.c.bf16 %v1366_v54, %v1363_v53 }
 0x395   : > { %3367 = vmatmul.mubr.msk.bf16.vlgmr.msra.gmra.mrb[8].mxu0 %vm1397_vm1, %v4697_v25  ;;  %v1449_v38 = vsel %vm1397_vm1, %v4706_v37, 0  ;;  %3377 = vmatpush3.bf16.msra.mxu1 %v4756_v55 }
 0x396   : > { %3371 = vmatpush3.bf16.xpose.msra.mxu0 %v1449_v38  ;;  %3372 = vmatprep.mubr.msk.bf16.mxu0 %vm4134_vm0, %v4133_v9 }
 0x397   : > { %3382 = vmatprep.subr.bf16.mxu0 %v4133_v9  ;;  %3388 = vmatprep.subr.bf16.mxu1 %v4133_v9 }
 0x39d   : > { %3373 = vmatmul.mubr.msk.bf16.vlgmr.msra.gmra.mrb[12].mxu0 %vm1397_vm1, %v4704_v36 }
 0x39e   : > { %3384 = vmatprep.mubr.msk.bf16.mxu0 %vm4134_vm0, %v4133_v9  ;;  %3383 = vmatpush3.bf16.msra.mxu0 %v4762_v13 }
 0x39f   : > { %3394 = vmatprep.subr.bf16.mxu0 %v4133_v9 }
 0x468   : > { %v1438_v62 = vpop.f32.mrb[8].mxu0 }
 0x469   : > { %v1492_v63 = vmul.f32 0.125, %v1438_v62  ;;  %v3368_v0 = vpop.f32.mrb[9].mxu0 }
 0x46a   : > { %v1441_v1 = vpop.f32.mrb[10].mxu0 }
 0x46b   : > { %v1493_v2 = vmul.f32 0.125, %v1441_v1  ;;  %v3369_v3 = vpop.f32.mrb[11].mxu0  ;;  %v1508_v4 = vadd.f32 %v4736_v59, %v1492_v63 }
 0x46d   : > { %v1513_v8 = vsel %vm1512_vm2, %v1508_v4, -inf  ;;  %v1509_v10 = vadd.f32 %v4736_v59, %v1493_v2 }
 0x46e   : > { %1514 = vmax.xlane.f32.xlu0 %v1513_v8 }
 0x46f   : > { %v1516_v18 = vsel %vm1512_vm2, %v1509_v10, -inf }
 0x470   : > { %v1485_v16 = vpop.f32.mrb[12].mxu0 }
 0x471   : > { %v1494_v17 = vmul.f32 0.125, %v1485_v16  ;;  %v3374_v19 = vpop.f32.mrb[13].mxu0 }
 0x472   : > { %1517 = vmax.xlane.f32.xlu0 %v1516_v18  ;;  %v1488_v20 = vpop.f32.mrb[14].mxu0 }
 0x473   : > { %v1495_v21 = vmul.f32 0.125, %v1488_v20  ;;  %v1510_v22 = vadd.f32 %v4742_v15, %v1494_v17  ;;  %v3375_v23 = vpop.f32.mrb[15].mxu0 }
 0x475   : > { %v1519_v24 = vsel %vm1512_vm2, %v1510_v22, -inf  ;;  %v1511_v27 = vadd.f32 %v4742_v15, %v1495_v21 }
 0x476   : > { %1520 = vmax.xlane.f32.xlu1 %v1519_v24 }
 0x477   : > { %v1522_v28 = vsel %vm1512_vm2, %v1511_v27, -inf }
 0x47a   : > { %1523 = vmax.xlane.f32.xlu1 %v1522_v28 }
 0x4fb   : > { %v1515_v29 = vpop.xlane.xlu0 %1514 }
 0x4fc   : > { %v1525_v30 = vsub.f32 %v1508_v4, %v1515_v29 }
 0x4fe   : > { %v1529_v31 = vmul.f32 1.442695, %v1525_v30 }
 0x4ff   : > { %v1518_v32 = vpop.xlane.xlu0 %1517 }
 0x500   : > { %3660 = vpow2.f32 %v1529_v31  ;;  %v1526_v33 = vsub.f32 %v1509_v10, %v1518_v32 }
 0x502   : > { %v1531_v34 = vmul.f32 1.442695, %v1526_v33 }
 0x503   : > { %v1521_v35 = vpop.xlane.xlu1 %1520 }
 0x504   : > { %3662 = vpow2.f32 %v1531_v34  ;;  %v1527_v38 = vsub.f32 %v1510_v22, %v1521_v35 }
 0x506   : > { %v1533_v39 = vmul.f32 1.442695, %v1527_v38 }
 0x507   : > { %v1524_v61 = vpop.xlane.xlu1 %1523 }
 0x508   : > { %3664 = vpow2.f32 %v1533_v39  ;;  %v1528_v62 = vsub.f32 %v1511_v27, %v1524_v61 }
 0x50a   : > { %v3661_v40 = vpop.eup %3660 }
 0x50b   : > { %v1537_v41 = vsel %vm1512_vm2, %v3661_v40, 0.0 }
 0x50c   : > { %1538 = vadd.xlane.f32.xlu0 %v1537_v41 }
 0x50e   : > { %v3663_v42 = vpop.eup %3662 }
 0x50f   : > { %v1540_v43 = vsel %vm1512_vm2, %v3663_v42, 0.0 }
 0x510   : > { %1541 = vadd.xlane.f32.xlu1 %v1540_v43 }
 0x512   : > { %v3665_v44 = vpop.eup %3664 }
 0x513   : > { %v1543_v45 = vsel %vm1512_vm2, %v3665_v44, 0.0 }
 0x514   : > { %1544 = vadd.xlane.f32.xlu0 %v1543_v45 }
 0x521   : > { %1708 = vrot.lane.b32.xlu1 %v4706_v37, %s4136_s24  ;;  %v1535_v37 = vmul.f32 1.442695, %v1528_v62 }
 0x523   : > { %3666 = vpow2.f32 %v1535_v37 }
 0x52a   : > { %1655 = vrot.lane.b32.xlu0 %v4699_v26, %s4136_s24 }
 0x52d   : > { %v3667_v63 = vpop.eup %3666 }
 0x52e   : > { %v1546_v0 = vsel %vm1512_vm2, %v3667_v63, 0.0 }
 0x545   : > { %1547 = vadd.xlane.f32.xlu1 %v1546_v0 }
 0x556   : > { %1652 = vrot.lane.b32.xlu1 %v4697_v25, %s4136_s24 }
 0x55a   : > { %1705 = vrot.lane.b32.xlu1 %v4704_v36, %s4136_s24 }
 0x599   : > { %v1539_v26 = vpop.xlane.xlu0 %1538 }
 0x59a   : > { %3668 = vrcp.f32 %v1539_v26 }
 0x59d   : > { %v1542_v1 = vpop.xlane.xlu1 %1541 }
 0x59e   : > { %3670 = vrcp.f32 %v1542_v1 }
 0x5a1   : > { %v1545_v2 = vpop.xlane.xlu0 %1544  ;;  %v1709_v25 = vpop.permute.xlu1 %1708 }
 0x5a2   : > { %3672 = vrcp.f32 %v1545_v2  ;;  %v1714_v24 = vsel %vm1397_vm1, %v1709_v25, 0 }
 0x5a4   : > { %v3669_v3 = vpop.eup %3668 }
 0x5a5   : > { %v1553_v5 = vmul.f32 %v3669_v3, %v3661_v40  ;;  %v1656_v10 = vpop.permute.xlu0 %1655 }
 0x5a6   : > { %v1661_v17 = vsel %vm1397_vm1, %v1656_v10, 0 }
 0x5a8   : > { %v3671_v4 = vpop.eup %3670 }
 0x5a9   : > { %v1554_v8 = vmul.f32 %v3671_v4, %v3663_v42 }
 0x5ab   : > { %v1557_v16 = vpack.c.bf16 %v1554_v8, %v1553_v5 }
 0x5ac   : > { %v3673_v19 = vpop.eup %3672 }
 0x5ad   : > { %3379 = vmatmul.mubr.msk.bf16.vlgmr.msra.gmra.mrb[4].mxu1 %vm1512_vm2, %v1557_v16  ;;  %v1555_v21 = vmul.f32 %v3673_v19, %v3665_v44 }
 0x5ae   : > { %3389 = vmatpush3.bf16.xpose.msra.mxu1 %v1661_v17  ;;  %3390 = vmatprep.mubr.msk.bf16.mxu1 %vm4134_vm0, %v4133_v9 }
 0x5af   : > { %3400 = vmatprep.subr.bf16.mxu1 %v4133_v9 }
 0x5d2   : > { %v1548_v36 = vpop.xlane.xlu1 %1547 }
 0x5d3   : > { %3674 = vrcp.f32 %v1548_v36 }
 0x5d6   : > { %v1653_v18 = vpop.permute.xlu1 %1652 }
 0x5d7   : > { %3391 = vmatmul.mubr.msk.bf16.vlgmr.msra.gmra.mrb[8].mxu1 %vm1397_vm1, %v1653_v18 }
 0x5d8   : > { %3402 = vmatprep.mubr.msk.bf16.mxu1 %vm4134_vm0, %v4133_v9 }
 0x5da   : > { %v1706_v27 = vpop.permute.xlu1 %1705 }
 0x5dd   : > { %v3675_v20 = vpop.eup %3674 }
 0x5de   : > { %v1556_v22 = vmul.f32 %v3675_v20, %v3667_v63 }
 0x5e0   : > { %v1558_v23 = vpack.c.bf16 %v1556_v22, %v1555_v21 }
 0x5e2   : > { %3385 = vmatmul.mubr.msk.bf16.vlgmr.msra.gmra.mrb[16].mxu0 %vm1512_vm2, %v1558_v23 }
 0x5e3   : > { %3395 = vmatpush3.bf16.xpose.msra.mxu0 %v1714_v24  ;;  %3396 = vmatprep.mubr.msk.bf16.mxu0 %vm4134_vm0, %v4133_v9 }
 0x5e4   : > { %3406 = vmatprep.subr.bf16.mxu0 %v4133_v9 }
 0x5ea   : > { %3397 = vmatmul.mubr.msk.bf16.vlgmr.msra.gmra.mrb[20].mxu0 %vm1397_vm1, %v1706_v27 }
 0x5eb   : > { %3408 = vmatprep.mubr.msk.bf16.mxu0 %vm4134_vm0, %v4133_v9 }
 0x680   : > { %v4787_v28 = vpop.f32.mrb[4].mxu1 }
 0x681   : > { %v3380_v29 = vpop.f32.mrb[5].mxu1 }
 0x682   : > { %v4789_v30 = vpop.f32.mrb[6].mxu1 }
 0x683   : > { %v1649_v31 = vpack.c.bf16 %v4789_v30, %v4787_v28  ;;  %v3381_v32 = vpop.f32.mrb[7].mxu1 }
 0x6aa   : > { %v1697_v33 = vpop.f32.mrb[8].mxu1 }
 0x6ab   : > { %v1757_v34 = vmul.f32 0.125, %v1697_v33  ;;  %v3392_v35 = vpop.f32.mrb[9].mxu1 }
 0x6ac   : > { %v1700_v38 = vpop.f32.mrb[10].mxu1 }
 0x6ad   : > { %v1758_v39 = vmul.f32 0.125, %v1700_v38  ;;  %v3393_v40 = vpop.f32.mrb[11].mxu1  ;;  %v1761_v41 = vadd.f32 %v1757_v34, %v4736_v59 }
 0x6af   : > { %v1765_v42 = vsel %vm1512_vm2, %v1761_v41, -inf  ;;  %v1762_v9 = vadd.f32 %v1758_v39, %v4736_v59 }
 0x6b0   : > { %1766 = vmax.xlane.f32.xlu0 %v1765_v42 }
 0x6b1   : > { %v1768_v43 = vsel %vm1512_vm2, %v1762_v9, -inf }
 0x6b2   : > { %1769 = vmax.xlane.f32.xlu1 %v1768_v43  ;;  %v3613_v43 = vld [vmem:[%s4608_s2 + $0x28] sm:$0xff]  }
 0x6b5   : > { %v4797_v44 = vpop.f32.mrb[16].mxu0 }
 0x6b6   : > { %v3386_v45 = vpop.f32.mrb[17].mxu0 }
 0x6b7   : > { %v4799_v46 = vpop.f32.mrb[18].mxu0  ;;  %v3614_v45 = vld [vmem:[%s4608_s2 + $0x30] sm:$0xff]  }
 0x6b8   : > { %v1650_v47 = vpack.c.bf16 %v4799_v46, %v4797_v44  ;;  %v3387_v48 = vpop.f32.mrb[19].mxu0 }
 0x6b9   : > { %v3615_v48 = vld [vmem:[%s4608_s2 + $0x38] sm:$0xff]  }
 0x6bd   : > { %v1750_v49 = vpop.f32.mrb[20].mxu0 }
 0x6be   : > { %v1759_v50 = vmul.f32 0.125, %v1750_v49  ;;  %v3398_v51 = vpop.f32.mrb[21].mxu0  ;;  %v3616_v49 = vld [vmem:[%s4608_s2] sm:$0xff]  }
 0x6bf   : > { %v1753_v53 = vpop.f32.mrb[22].mxu0 }
 0x6c0   : > { %v1760_v54 = vmul.f32 0.125, %v1753_v53  ;;  %v3399_v56 = vpop.f32.mrb[23].mxu0  ;;  %v1763_v59 = vadd.f32 %v1759_v50, %v4742_v15 }
 0x6c2   : > { %v1771_v57 = vsel %vm1512_vm2, %v1763_v59, -inf  ;;  %v1764_v61 = vadd.f32 %v1760_v54, %v4742_v15 }
 0x6c3   : > { %1772 = vmax.xlane.f32.xlu0 %v1771_v57 }
 0x6c4   : > { %v1774_v62 = vsel %vm1512_vm2, %v1764_v61, -inf }
 0x6c7   : > { %1775 = vmax.xlane.f32.xlu0 %v1774_v62 }
 0x73d   : > { %v1767_v37 = vpop.xlane.xlu0 %1766 }
 0x73e   : > { %v1777_v63 = vsub.f32 %v1761_v41, %v1767_v37 }
 0x73f   : > { %v1770_v0 = vpop.xlane.xlu1 %1769 }
 0x740   : > { %v1781_v26 = vmul.f32 1.442695, %v1777_v63  ;;  %v1778_v1 = vsub.f32 %v1762_v9, %v1770_v0  ;;  %v3612_v9 = vld [vmem:[%s4608_s2 + $0x20] sm:$0xff]   ;;  %v3617_v63 = vld [vmem:[%s4608_s2 + $0x8] sm:$0xff]   ;;  %v3618_v0 = vld [vmem:[%s4608_s2 + $0x10] sm:$0xff]  }
 0x742   : > { %3676 = vpow2.f32 %v1781_v26  ;;  %v1783_v2 = vmul.f32 1.442695, %v1778_v1  ;;  %v3619_v26 = vld [vmem:[%s4608_s2 + $0x18] sm:$0xff]   ;;  %v3212_v1 = vld [vmem:[%s811_s10] ss:$0 sm:$0xff]  ;;  %s5161_s10 = sld [smem:[#allocation36_spill]] (!%p3250_p6) }
 0x744   : > { %3678 = vpow2.f32 %v1783_v2 }
 0x74c   : > { %v3677_v3 = vpop.eup %3676 }
 0x74d   : > { %v1789_v4 = vsel %vm1512_vm2, %v3677_v3, 0.0 }
 0x74e   : > { %v3679_v5 = vpop.eup %3678  ;;  %1790 = vadd.xlane.f32.xlu0 %v1789_v4 }
 0x74f   : > { %v1792_v8 = vsel %vm1512_vm2, %v3679_v5, 0.0 }
 0x750   : > { %1793 = vadd.xlane.f32.xlu1 %v1792_v8  ;;  %v1773_v15 = vpop.xlane.xlu0 %1772 }
 0x751   : > { %v1779_v10 = vsub.f32 %v1763_v59, %v1773_v15 }
 0x753   : > { %v1785_v16 = vmul.f32 1.442695, %v1779_v10  ;;  %v3620_v10 = vld [vmem:[%s4618_s18] ss:$8 sps:$4 sm:$0xff]  }
 0x754   : > { %v1776_v17 = vpop.xlane.xlu0 %1775 }
 0x755   : > { %3680 = vpow2.f32 %v1785_v16  ;;  %v1780_v25 = vsub.f32 %v1764_v61, %v1776_v17  ;;  %v3622_v16 = vld [vmem:[%s4618_s18 + $0x4] ss:$8 sps:$4 sm:$0xff]   ;;  %v3625_v17 = vld [vmem:[%s4618_s18 + $0x14] ss:$8 sps:$4 sm:$0xff]  }
 0x757   : > { %v1787_v36 = vmul.f32 1.442695, %v1780_v25  ;;  %v3623_v25 = vld [vmem:[%s4618_s18 + $0x10] ss:$8 sps:$4 sm:$0xff]  }
 0x759   : > { %3682 = vpow2.f32 %v1787_v36 }
 0x75f   : > { %v3681_v18 = vpop.eup %3680 }
 0x760   : > { %v1795_v19 = vsel %vm1512_vm2, %v3681_v18, 0.0 }
 0x761   : > { %1796 = vadd.xlane.f32.xlu0 %v1795_v19 }
 0x763   : > { %v3683_v20 = vpop.eup %3682 }
 0x764   : > { %v1798_v21 = vsel %vm1512_vm2, %v3683_v20, 0.0 }
 0x765   : > { %1799 = vadd.xlane.f32.xlu1 %v1798_v21 }
 0x776   : > { %1860 = vrot.lane.b32.xlu1 %v4762_v13, %s4136_s24 }
 0x777   : > { %1812 = vrot.lane.b32.xlu0 %v4756_v55, %s4136_s24  ;;  %s5166_s24 = sld [smem:[#allocation38_spill]] (!%p3250_p6) }
 0x7db   : > { %v1791_v23 = vpop.xlane.xlu0 %1790 }
 0x7dd   : > { %v1794_v22 = vpop.xlane.xlu1 %1793 }
 0x7de   : > { %3684 = vrcp.f32 %v1794_v22 }
 0x7df   : > { %3686 = vrcp.f32 %v1791_v23 }
 0x7e8   : > { %v3685_v24 = vpop.eup %3684 }
 0x7e9   : > { %v3687_v29 = vpop.eup %3686  ;;  %v1806_v32 = vmul.f32 %v3685_v24, %v3679_v5 }
 0x7ea   : > { %v1805_v33 = vmul.f32 %v3687_v29, %v3677_v3 }
 0x7ec   : > { %v1809_v13 = vpack.c.bf16 %v1806_v32, %v1805_v33 }
 0x7ee   : > { %v1797_v27 = vpop.xlane.xlu0 %1796 }
 0x7ef   : > { %3688 = vrcp.f32 %v1797_v27 }
 0x7f2   : > { %v1800_v34 = vpop.xlane.xlu1 %1799  ;;  %v1813_v35 = vpop.permute.xlu0 %1812 }
 0x7f3   : > { %3690 = vrcp.f32 %v1800_v34  ;;  %3401 = vmatpush3.bf16.msra.mxu1 %v1813_v35  ;;  %v3628_v34 = vld [vmem:[%s4618_s18 + $0x24] ss:$8 sps:$4 sm:$0xff]   ;;  %v3626_v35 = vld [vmem:[%s4618_s18 + $0x20] ss:$8 sps:$4 sm:$0xff]  }
 0x7f4   : > { %3412 = vmatprep.subr.bf16.mxu1 %v3612_v9 }
 0x7f6   : > { %v1861_v38 = vpop.permute.xlu1 %1860  ;;  %3403 = vmatmul.mubr.msk.bf16.vlgmr.msra.gmra.mrb[12].mxu1 %vm1512_vm2, %v1809_v13  ;;  %v3631_v13 = vld [vmem:[%s4618_s18 + $0x34] ss:$8 sps:$4 sm:$0xff]  }
 0x7f7   : > { %3407 = vmatpush3.bf16.msra.mxu0 %v1861_v38  ;;  %3413 = vmatpush3.bf16.msra.mxu1 %v3612_v9  ;;  %v3629_v38 = vld [vmem:[%s4618_s18 + $0x30] ss:$8 sps:$4 sm:$0xff]   ;;  %v3638_v9 = vld [vmem:[%s4618_s18 + $0x60] ss:$8 sps:$4 sm:$0xff]  }
 0x7f8   : > { %3414 = vmatprep.subr.bf16.mxu1 %v3613_v43  ;;  %2259 = vmatprep.subr.bf16.mxu0 %v3622_v16 }
 0x7f9   : > { %v3689_v55 = vpop.eup %3688 }
 0x7fa   : > { %v1807_v40 = vmul.f32 %v3689_v55, %v3681_v18  ;;  %v3634_v55 = vld [vmem:[%s4618_s18 + $0x44] ss:$8 sps:$4 sm:$0xff]  }
 0x7fb   : > { %3415 = vmatpush3.bf16.msra.mxu1 %v3613_v43  ;;  %v3643_v43 = vld [vmem:[%s4618_s18 + $0x74] ss:$8 sps:$4 sm:$0xff]  }
 0x7fc   : > { %3416 = vmatprep.subr.bf16.mxu1 %v3614_v45 }
 0x7fd   : > { %v3691_v39 = vpop.eup %3690 }
 0x7fe   : > { %v1808_v41 = vmul.f32 %v3691_v39, %v3683_v20  ;;  %v3632_v39 = vld [vmem:[%s4618_s18 + $0x40] ss:$8 sps:$4 sm:$0xff]  }
 0x7ff   : > { %3417 = vmatpush3.bf16.msra.mxu1 %v3614_v45  ;;  %v3641_v45 = vld [vmem:[%s4618_s18 + $0x70] ss:$8 sps:$4 sm:$0xff]  }
 0x800   : > { %v1810_v42 = vpack.c.bf16 %v1808_v41, %v1807_v40  ;;  %3418 = vmatprep.subr.bf16.mxu1 %v3615_v48  ;;  %v3637_v40 = vld [vmem:[%s4618_s18 + $0x54] ss:$8 sps:$4 sm:$0xff]   ;;  %v3635_v41 = vld [vmem:[%s4618_s18 + $0x50] ss:$8 sps:$4 sm:$0xff]  }
 0x802   : > { %3409 = vmatmul.mubr.msk.bf16.vlgmr.msra.gmra.mrb[24].mxu0 %vm1512_vm2, %v1810_v42  ;;  %v3640_v42 = vld [vmem:[%s4618_s18 + $0x64] ss:$8 sps:$4 sm:$0xff]  }
 0x803   : > { %2291 = vmatprep.mubr.bf16.mxu0 %v4132_v52  ;;  %3419 = vmatpush3.bf16.msra.mxu1 %v3615_v48 }
 0x804   : > { %3424 = vmatprep.subr.bf16.mxu1 %v3616_v49  ;;  %2260 = vmatpush1.bf16.msra.mxu0 %v3620_v10 }
 0x805   : > { %2261 = vmatprep.subr.bf16.mxu0 %v3625_v17 }
 0x808   : > { %2262 = vmatpush1.bf16.msra.mxu0 %v3623_v25 }
 0x809   : > { %2263 = vmatprep.subr.bf16.mxu0 %v3628_v34 }
 0x80c   : > { %2264 = vmatpush1.bf16.msra.mxu0 %v3626_v35 }
 0x80d   : > { %2265 = vmatprep.subr.bf16.mxu0 %v3631_v13 }
 0x810   : > { %2266 = vmatpush1.bf16.msra.mxu0 %v3629_v38 }
 0x811   : > { %2267 = vmatprep.subr.bf16.mxu0 %v3634_v55 }
 0x814   : > { %2268 = vmatpush1.bf16.msra.mxu0 %v3632_v39 }
 0x815   : > { %2269 = vmatprep.subr.bf16.mxu0 %v3637_v40 }
 0x818   : > { %2270 = vmatpush1.bf16.msra.mxu0 %v3635_v41 }
 0x819   : > { %2271 = vmatprep.subr.bf16.mxu0 %v3640_v42 }
 0x81c   : > { %2272 = vmatpush1.bf16.msra.mxu0 %v3638_v9 }
 0x81d   : > { %2273 = vmatprep.subr.bf16.mxu0 %v3643_v43 }
 0x820   : > { %2274 = vmatpush1.bf16.msra.mxu0 %v3641_v45 }
 0x8c9   : > { %v1852_v50 = vpop.f32.mrb[12].mxu1 }
 0x8ca   : > { %v3404_v51 = vpop.f32.mrb[13].mxu1 }
 0x8cb   : > { %v1855_v53 = vpop.f32.mrb[14].mxu1 }
 0x8cc   : > { %v1907_v54 = vpack.c.bf16 %v1855_v53, %v1852_v50  ;;  %v3405_v56 = vpop.f32.mrb[15].mxu1 }
 0x8ce   : > { %3420 = vmatprep.mubr.msk.bf16.mxu1 %vm1397_vm1, %v1907_v54 }
 0x8d5   : > { %v1900_v59 = vpop.f32.mrb[24].mxu0 }
 0x8d6   : > { %v3410_v57 = vpop.f32.mrb[25].mxu0 }
 0x8d7   : > { %v1903_v61 = vpop.f32.mrb[26].mxu0 }
 0x8d8   : > { %v1908_v62 = vpack.c.bf16 %v1903_v61, %v1900_v59  ;;  %v3411_v37 = vpop.f32.mrb[27].mxu0 }
 0x8da   : > { %3421 = vmatmul.mubr.msk.bf16.vlgmr.msra.gmra.mrb[16].mxu1 %vm1397_vm1, %v1908_v62 }
 0x8db   : > { %3425 = vmatpush3.bf16.msra.mxu1 %v3616_v49  ;;  %3432 = vmatprep.mubr.msk.bf16.mxu1 %vm1397_vm1, %v1649_v31 }
 0x8dc   : > { %3426 = vmatprep.subr.bf16.mxu1 %v3617_v63 }
 0x8df   : > { %3427 = vmatpush3.bf16.msra.mxu1 %v3617_v63 }
 0x8e0   : > { %3428 = vmatprep.subr.bf16.mxu1 %v3618_v0 }
 0x8e3   : > { %3429 = vmatpush3.bf16.msra.mxu1 %v3618_v0  ;;  %v3213_v0 = vld [vmem:[%s819_s6] ss:$0 sm:$0xff] }
 0x8e4   : > { %3430 = vmatprep.subr.bf16.mxu1 %v3619_v26 }
 0x8e7   : > { %3431 = vmatpush3.bf16.msra.mxu1 %v3619_v26 }
 0x8ea   : > { %3433 = vmatmul.mubr.msk.bf16.vlgmr.msra.gmra.mrb[16].mxu1 %vm1397_vm1, %v1650_v47 }
 0x9bd   : > { %v3434_v2 = vpop.f32.mrb[16].mxu1 }
 0x9be   : > { %v2052_v28 = vpop.f32.mrb[17].mxu1  ;;  %v2076_v15 = vadd.f32 %v3434_v2, %v3212_v1 }
 0x9bf   : > { %v2074_v30 = vadd.f32 %v3212_v1, %v2052_v28  ;;  %v3435_v31 = vpop.f32.mrb[18].mxu1 }
 0x9c0   : > { %v2055_v3 = vpop.f32.mrb[19].mxu1  ;;  %v2077_v4 = vadd.f32 %v3435_v31, %v3212_v1  ;;  %v2080_v47 = vadd.f32 %v2076_v15, %v4670_v6 }
 0x9c1   : > { %v2075_v5 = vadd.f32 %v3212_v1, %v2055_v3  ;;  %v2078_v8 = vadd.f32 %v2074_v30, %v4655_v58  ;;  %v3214_v30 = vld [vmem:[%s827_s30] ss:$0 sm:$0xff]  ;;  %s5163_s30 = sld [smem:[#allocation37_spill]] (!%p3250_p6) }
 0x9c2   : > { %v2081_v46 = vadd.f32 %v2077_v4, %v4672_v7 }
 0x9c3   : > { %2084 = vadd.xlane.f32.xlu1 %v2078_v8  ;;  %v2079_v44 = vadd.f32 %v2075_v5, %v4658_v60 }
 0x9c5   : > { %2086 = vadd.xlane.f32.xlu0 %v2079_v44 }
 0x9c7   : > { %2090 = vadd.xlane.f32.xlu1 %v2081_v46 }
 0x9c9   : > { %2088 = vadd.xlane.f32.xlu0 %v2080_v47 }
 0xa50   : > { %v2085_v58 = vpop.xlane.xlu1 %2084 }
 0xa51   : > { %v2093_v36 = vmul.f32 0.0078125, %v2085_v58  ;;  %v3644_v58 = vld [vmem:[%s4623_s9 + $0x40] sm:$0xff]  }
 0xa52   : > { %v2087_v18 = vpop.xlane.xlu0 %2086  ;;  %3306 = vmatprep.subr.bf16.mxu1 %v3644_v58 }
 0xa53   : > { %v2097_v19 = vsub.f32 %v2078_v8, %v2093_v36  ;;  %v2094_v60 = vmul.f32 0.0078125, %v2087_v18  ;;  %v3645_v36 = vld [vmem:[%s4623_s9] sm:$0xff]   ;;  %v3646_v18 = vld [vmem:[%s4623_s9 + $0x48] sm:$0xff]  }
 0xa54   : > { %v2091_v20 = vpop.xlane.xlu1 %2090  ;;  %3307 = vmatpush3.bf16.msra.mxu1 %v3645_v36 }
 0xa55   : > { %v2098_v7 = vsub.f32 %v2079_v44, %v2094_v60  ;;  %v2096_v21 = vmul.f32 0.0078125, %v2091_v20  ;;  %v2101_v6 = vmul.f32 %v2097_v19, %v2097_v19  ;;  %3308 = vmatprep.subr.bf16.mxu1 %v3646_v18  ;;  %v3649_v60 = vld [vmem:[%s4623_s9 + $0x10] sm:$0xff]   ;;  %v3650_v20 = vld [vmem:[%s4623_s9 + $0x58] sm:$0xff]  }
 0xa56   : > { %v2089_v22 = vpop.xlane.xlu0 %2088 }
 0xa57   : > { %v2100_v23 = vsub.f32 %v2081_v46, %v2096_v21  ;;  %v2095_v24 = vmul.f32 0.0078125, %v2089_v22  ;;  %2105 = vadd.xlane.f32.xlu0 %v2101_v6  ;;  %v2102_v27 = vmul.f32 %v2098_v7, %v2098_v7  ;;  %v3652_v21 = vld [vmem:[%s4623_s9 + $0x60] sm:$0xff]   ;;  %v3654_v22 = vld [vmem:[%s4623_s9 + $0x68] sm:$0xff]  }
 0xa58   : > { %v3653_v6 = vld [vmem:[%s4623_s9 + $0x20] sm:$0xff]  }
 0xa59   : > { %v2099_v29 = vsub.f32 %v2080_v47, %v2095_v24  ;;  %2107 = vadd.xlane.f32.xlu1 %v2102_v27  ;;  %v2104_v32 = vmul.f32 %v2100_v23, %v2100_v23  ;;  %v3656_v24 = vld [vmem:[%s4623_s9 + $0x70] sm:$0xff]  }
 0xa5a   : > { %v3657_v27 = vld [vmem:[%s4623_s9 + $0x30] sm:$0xff]  }
 0xa5b   : > { %v2103_v33 = vmul.f32 %v2099_v29, %v2099_v29 }
 0xa5d   : > { %2111 = vadd.xlane.f32.xlu1 %v2104_v32  ;;  %2109 = vadd.xlane.f32.xlu0 %v2103_v33  ;;  %v3659_v32 = vld [vmem:[%s4623_s9 + $0x38] sm:$0xff]   ;;  %v2167_v33 = vld [vmem:[%s4628_s4] sm:$0x3] }
 0xa5e   : > { %v2172_v34 = vrot.slane %v2167_v33, %v4686_v12  ;;  %v2176_v35 = vrot.slane %v2167_v33, %v1138_v14 }
 0xae4   : > { %v2106_v48 = vpop.xlane.xlu0 %2105 }
 0xae5   : > { %v2113_v49 = vmul.f32 0.0078125, %v2106_v48 }
 0xae6   : > { %v2108_v50 = vpop.xlane.xlu1 %2107 }
 0xae7   : > { %v2117_v51 = vadd.f32 1e-12, %v2113_v49  ;;  %v2114_v53 = vmul.f32 0.0078125, %v2108_v50 }
 0xae9   : > { %3692 = vrsqrt.f32 %v2117_v51  ;;  %v2118_v54 = vadd.f32 1e-12, %v2114_v53 }
 0xaea   : > { %v2112_v56 = vpop.xlane.xlu1 %2111  ;;  %v2110_v59 = vpop.xlane.xlu0 %2109 }
 0xaeb   : > { %3694 = vrsqrt.f32 %v2118_v54  ;;  %v2116_v57 = vmul.f32 0.0078125, %v2112_v56  ;;  %v2115_v61 = vmul.f32 0.0078125, %v2110_v59 }
 0xaed   : > { %v2120_v62 = vadd.f32 1e-12, %v2116_v57  ;;  %v2119_v37 = vadd.f32 1e-12, %v2115_v61 }
 0xaef   : > { %3696 = vrsqrt.f32 %v2120_v62 }
 0xaf0   : > { %3698 = vrsqrt.f32 %v2119_v37 }
 0xaf3   : > { %v3693_v63 = vpop.eup %3692 }
 0xaf4   : > { %v2125_v26 = vmul.f32 %v3693_v63, %v2097_v19  ;;  %v3647_v19 = vld [vmem:[%s4623_s9 + $0x8] sm:$0xff]  }
 0xaf5   : > { %v3695_v1 = vpop.eup %3694  ;;  %3309 = vmatpush3.bf16.msra.mxu1 %v3647_v19 }
 0xaf6   : > { %v2126_v2 = vmul.f32 %v3695_v1, %v2098_v7  ;;  %v2135_v28 = vmul.f32 %v3213_v0, %v2125_v26  ;;  %v3651_v7 = vld [vmem:[%s4623_s9 + $0x18] sm:$0xff]  }
 0xaf8   : > { %v2136_v31 = vmul.f32 %v3213_v0, %v2126_v2  ;;  %v4862_v5 = vadd.f32 %v3214_v30, %v2135_v28 }
 0xaf9   : > { %v3697_v3 = vpop.eup %3696 }
 0xafa   : > { %v3699_v4 = vpop.eup %3698  ;;  %v4864_v8 = vadd.f32 %v3214_v30, %v2136_v31  ;;  %v2128_v15 = vmul.f32 %v3697_v3, %v2100_v23  ;;  %v3655_v23 = vld [vmem:[%s4623_s9 + $0x28] sm:$0xff]  }
 0xafb   : > { %v2127_v44 = vmul.f32 %v3699_v4, %v2099_v29  ;;  %v3658_v29 = vld [vmem:[%s4623_s9 + $0x78] sm:$0xff]  }
 0xafc   : > { %v2149_v46 = vpack.c.bf16 %v4864_v8, %v4862_v5  ;;  %v2138_v47 = vmul.f32 %v3213_v0, %v2128_v15 }
 0xafd   : > { %v2137_v10 = vmul.f32 %v3213_v0, %v2127_v44 }
 0xafe   : > { %2292 = vmatmul.mubr.bf16.vlgmr.msra.gmra.mrb[28].mxu0 %v2149_v46  ;;  %v4871_v17 = vadd.f32 %v3214_v30, %v2138_v47 }
 0xaff   : > { %2301 = vmatprep.mubr.bf16.mxu0 %v4132_v52  ;;  %v4869_v16 = vadd.f32 %v3214_v30, %v2137_v10  ;;  %v3648_v52 = vld [vmem:[%s4623_s9 + $0x50] sm:$0xff]  }
 0xb00   : > { %3310 = vmatprep.subr.bf16.mxu1 %v3648_v52 }
 0xb01   : > { %v2150_v25 = vpack.c.bf16 %v4871_v17, %v4869_v16  ;;  %3311 = vmatpush3.bf16.msra.mxu1 %v3649_v60 }
 0xb02   : > { %3312 = vmatprep.subr.bf16.mxu1 %v3650_v20 }
 0xb05   : > { %3313 = vmatpush3.bf16.msra.mxu1 %v3651_v7 }
 0xb06   : > { %2302 = vmatmul.mubr.bf16.gmra.mrb[32].mxu0 %v2150_v25  ;;  %3314 = vmatprep.subr.bf16.mxu1 %v3652_v21 }
 0xb09   : > { %3315 = vmatpush3.bf16.msra.mxu1 %v3653_v6 }
 0xb0a   : > { %3316 = vmatprep.subr.bf16.mxu1 %v3654_v22 }
 0xb0d   : > { %3317 = vmatpush3.bf16.msra.mxu1 %v3655_v23 }
 0xb0e   : > { %3318 = vmatprep.subr.bf16.mxu1 %v3656_v24 }
 0xb11   : > { %3319 = vmatpush3.bf16.msra.mxu1 %v3657_v27 }
 0xb12   : > { %3320 = vmatprep.subr.bf16.mxu1 %v3658_v29 }
 0xb15   : > { %3321 = vmatpush3.bf16.msra.mxu1 %v3659_v32 }
 0xbd1   : > { %v2293_v13 = vpop.f32.mrb[28].mxu0 }
 0xbd2   : > { %v4895_v38 = vadd.f32 %v2293_v13, %v2172_v34  ;;  %v2295_v55 = vpop.f32.mrb[29].mxu0 }
 0xbd3   : > { %v4897_v39 = vadd.f32 %v2295_v55, %v2176_v35  ;;  %v2297_v40 = vpop.f32.mrb[30].mxu0 }
 0xbd4   : > { %v2320_v41 = vmul.f32 0.044715, %v4895_v38  ;;  %v4900_v42 = vadd.f32 %v2297_v40, %v2172_v34  ;;  %v2299_v9 = vpop.f32.mrb[31].mxu0  ;;  %v2312_v40 = vmul.f32 0.5, %v4895_v38 }
 0xbd5   : > { %v2321_v43 = vmul.f32 0.044715, %v4897_v39  ;;  %v4903_v45 = vadd.f32 %v2299_v9, %v2176_v35 }
 0xbd6   : > { %v2328_v12 = vmul.f32 %v2320_v41, %v4895_v38  ;;  %v2322_v11 = vmul.f32 0.044715, %v4900_v42  ;;  %v2314_v41 = vmul.f32 0.5, %v4900_v42 }
 0xbd7   : > { %v2329_v14 = vmul.f32 %v2321_v43, %v4897_v39  ;;  %v2323_v48 = vmul.f32 0.044715, %v4903_v45  ;;  %v2313_v43 = vmul.f32 0.5, %v4897_v39 }
 0xbd8   : > { %v2336_v49 = vmul.f32 %v2328_v12, %v4895_v38  ;;  %v2330_v50 = vmul.f32 %v2322_v11, %v4900_v42  ;;  %v2315_v12 = vmul.f32 0.5, %v4903_v45 }
 0xbd9   : > { %v2337_v51 = vmul.f32 %v2329_v14, %v4897_v39  ;;  %v2331_v53 = vmul.f32 %v2323_v48, %v4903_v45  ;;  %v2303_v54 = vpop.f32.mrb[32].mxu0 }
 0xbda   : > { %v2344_v56 = vadd.f32 %v2336_v49, %v4895_v38  ;;  %v2338_v59 = vmul.f32 %v2330_v50, %v4900_v42  ;;  %v4915_v57 = vadd.f32 %v2303_v54, %v2172_v34  ;;  %v2305_v61 = vpop.f32.mrb[33].mxu0 }
 0xbdb   : > { %v2339_v62 = vmul.f32 %v2331_v53, %v4903_v45  ;;  %v4918_v37 = vadd.f32 %v2305_v61, %v2176_v35  ;;  %v2307_v63 = vpop.f32.mrb[34].mxu0  ;;  %v2345_v0 = vadd.f32 %v2337_v51, %v4897_v39 }
 0xbdc   : > { %v2352_v26 = vmul.f32 0.7978846, %v2344_v56  ;;  %v2346_v1 = vadd.f32 %v2338_v59, %v4900_v42  ;;  %v2324_v2 = vmul.f32 0.044715, %v4915_v57  ;;  %v2308_v28 = vadd.f32 %v2307_v63, %v2172_v34  ;;  %v2309_v30 = vpop.f32.mrb[35].mxu0 }
 0xbdd   : > { %v2325_v31 = vmul.f32 0.044715, %v4918_v37  ;;  %v2310_v3 = vadd.f32 %v2309_v30, %v2176_v35  ;;  %v2347_v4 = vadd.f32 %v2339_v62, %v4903_v45  ;;  %v2353_v15 = vmul.f32 0.7978846, %v2345_v0 }
 0xbde   : > { %3700 = vtanh.f32 %v2352_v26  ;;  %v2354_v44 = vmul.f32 0.7978846, %v2346_v1  ;;  %v2332_v46 = vmul.f32 %v2324_v2, %v4915_v57  ;;  %v2326_v47 = vmul.f32 0.044715, %v2308_v28 }
 0xbdf   : > { %v2333_v10 = vmul.f32 %v2325_v31, %v4918_v37  ;;  %v2327_v25 = vmul.f32 0.044715, %v2310_v3  ;;  %v2355_v58 = vmul.f32 0.7978846, %v2347_v4  ;;  %3702 = vtanh.f32 %v2353_v15 }
 0xbe0   : > { %3704 = vtanh.f32 %v2354_v44  ;;  %v2340_v36 = vmul.f32 %v2332_v46, %v4915_v57  ;;  %v2334_v18 = vmul.f32 %v2326_v47, %v2308_v28  ;;  %v2316_v39 = vmul.f32 0.5, %v4915_v57  ;;  %v3231_v46 = vld [vmem:[%s844_s13] ss:$0 sm:$0xff] }
 0xbe1   : > { %v2341_v19 = vmul.f32 %v2333_v10, %v4918_v37  ;;  %v2335_v52 = vmul.f32 %v2327_v25, %v2310_v3  ;;  %3706 = vtanh.f32 %v2355_v58  ;;  %v2318_v42 = vmul.f32 0.5, %v2308_v28 }
 0xbe2   : > { %v2342_v60 = vmul.f32 %v2334_v18, %v2308_v28  ;;  %v2348_v20 = vadd.f32 %v2340_v36, %v4915_v57  ;;  %v2317_v63 = vmul.f32 0.5, %v4918_v37  ;;  %v2319_v0 = vmul.f32 0.5, %v2310_v3 }
 0xbe3   : > { %v2343_v7 = vmul.f32 %v2335_v52, %v2310_v3  ;;  %v2349_v21 = vadd.f32 %v2341_v19, %v4918_v37 }
 0xbe4   : > { %v2350_v6 = vadd.f32 %v2342_v60, %v2308_v28  ;;  %v2356_v22 = vmul.f32 0.7978846, %v2348_v20 }
 0xbe5   : > { %v2351_v23 = vadd.f32 %v2343_v7, %v2310_v3  ;;  %v2357_v24 = vmul.f32 0.7978846, %v2349_v21 }
 0xbe6   : > { %v2358_v27 = vmul.f32 0.7978846, %v2350_v6  ;;  %3708 = vtanh.f32 %v2356_v22 }
 0xbe7   : > { %v2359_v29 = vmul.f32 0.7978846, %v2351_v23  ;;  %3710 = vtanh.f32 %v2357_v24 }
 0xbe8   : > { %v3701_v32 = vpop.eup %3700  ;;  %3712 = vtanh.f32 %v2358_v27 }
 0xbe9   : > { %v3703_v33 = vpop.eup %3702  ;;  %v2368_v34 = vadd.f32 1.0, %v3701_v32  ;;  %3714 = vtanh.f32 %v2359_v29 }
 0xbea   : > { %v3705_v35 = vpop.eup %3704  ;;  %v2369_v13 = vadd.f32 1.0, %v3703_v33 }
 0xbeb   : > { %v3707_v55 = vpop.eup %3706  ;;  %v2370_v9 = vadd.f32 1.0, %v3705_v35  ;;  %v2376_v14 = vmul.f32 %v2368_v34, %v2312_v40 }
 0xbec   : > { %v2371_v11 = vadd.f32 1.0, %v3707_v55  ;;  %v2377_v49 = vmul.f32 %v2369_v13, %v2313_v43 }
 0xbed   : > { %v2378_v48 = vmul.f32 %v2370_v9, %v2314_v41 }
 0xbee   : > { %v2379_v50 = vmul.f32 %v2371_v11, %v2315_v12 }
 0xbef   : > { %v2384_v51 = vpack.c.bf16 %v2378_v48, %v2376_v14 }
 0xbf0   : > { %v3709_v53 = vpop.eup %3708  ;;  %v2385_v54 = vpack.c.bf16 %v2379_v50, %v2377_v49 }
 0xbf1   : > { %v3711_v56 = vpop.eup %3710  ;;  %v2372_v59 = vadd.f32 1.0, %v3709_v53 }
 0xbf2   : > { %v3713_v61 = vpop.eup %3712  ;;  %2555 = vmatprep.mubr.bf16.mxu1 %v2385_v54  ;;  %v2373_v38 = vadd.f32 1.0, %v3711_v56 }
 0xbf3   : > { %v3715_v62 = vpop.eup %3714  ;;  %2556 = vmatmul.mubr.bf16.vlgmr.msra.gmra.mrb[20].mxu1 %v2384_v51  ;;  %v2374_v45 = vadd.f32 1.0, %v3713_v61  ;;  %v2380_v1 = vmul.f32 %v2372_v59, %v2316_v39 }
 0xbf4   : > { %v2375_v26 = vadd.f32 1.0, %v3715_v62  ;;  %v2381_v30 = vmul.f32 %v2373_v38, %v2317_v63  ;;  %v3248_v38 = vld [vmem:[%s852_s7] ss:$0 sm:$0xff] }
 0xbf5   : > { %v2382_v2 = vmul.f32 %v2374_v45, %v2318_v42  ;;  %v3249_v42 = vld [vmem:[%s860_s26] ss:$0 sm:$0xff]  ;;  %s5164_s26 = sld [smem:[#allocation39_spill]] (!%p3250_p6) }
 0xbf6   : > { %v2383_v31 = vmul.f32 %v2375_v26, %v2319_v0 }
 0xbf7   : > { %v2386_v4 = vpack.c.bf16 %v2382_v2, %v2380_v1 }
 0xbf8   : > { %v2387_v15 = vpack.c.bf16 %v2383_v31, %v2381_v30 }
 0xbfa   : > { %2563 = vmatprep.mubr.bf16.mxu1 %v2387_v15 }
 0xbfb   : > { %2564 = vmatmul.mubr.bf16.gmra.mrb[24].mxu1 %v2386_v4  ;;  %s5165_s23 = smov (!%p3250_p6), %s5164_s26 }
 0xcc6   : > { %v3322_v44 = vpop.f32.mrb[20].mxu1 }
 0xcc7   : > { %v3323_v47 = vpop.f32.mrb[21].mxu1 }
 0xcc8   : > { %v3324_v10 = vadd.f32 %v3323_v47, %v3322_v44  ;;  %v3325_v57 = vpop.f32.mrb[22].mxu1 }
 0xcc9   : > { %v3326_v28 = vpop.f32.mrb[23].mxu1 }
 0xcca   : > { %v2558_v25 = vadd.f32 %v3324_v10, %v3231_v46  ;;  %v3327_v58 = vadd.f32 %v3326_v28, %v3325_v57  ;;  %v3726_v10 = vld [vmem:[%s5161_s10] sm:$0xff] (!%p3250_p6)   ;;  %v3727_v28 = vld [vmem:[%s5161_s10 + $0x8] sm:$0xff] (!%p3250_p6)  }
 0xccb   : > { %3436 = vmatprep.subr.bf16.mxu0 (!%p3250_p6), %v3726_v10 }
 0xccc   : > { %v2561_v37 = vadd.f32 %v3327_v58, %v3231_v46  ;;  %v2572_v3 = vadd.f32 %v2558_v25, %v4862_v5  ;;  %v4137_v25 = vmov (!%p3250_p6), 0   ;;  %3437 = vmatpush3.bf16.msra.mxu0 (!%p3250_p6), %v3726_v10  ;;  %v3728_v58 = vld [vmem:[%s5161_s10 + $0x10] sm:$0xff] (!%p3250_p6)  }
 0xccd   : > { %3724 = vset.pattern.permute.xlu0 (!%p3250_p6), %v4137_v25  ;;  %3725 = vset.pattern.permute.xlu1 (!%p3250_p6), %v4137_v25 }
 0xcce   : > { %v3328_v36 = vpop.f32.mrb[24].mxu1  ;;  %2578 = vadd.xlane.f32.xlu0 %v2572_v3  ;;  %v2573_v18 = vadd.f32 %v2561_v37, %v4864_v8  ;;  %3438 = vmatprep.subr.bf16.mxu0 (!%p3250_p6), %v3727_v28  ;;  %v3729_v37 = vld [vmem:[%s5161_s10 + $0x18] sm:$0xff] (!%p3250_p6)  }
 0xccf   : > { %v3329_v19 = vpop.f32.mrb[25].mxu1 }
 0xcd0   : > { %v3330_v52 = vadd.f32 %v3329_v19, %v3328_v36  ;;  %v3331_v60 = vpop.f32.mrb[26].mxu1  ;;  %2580 = vadd.xlane.f32.xlu1 %v2573_v18  ;;  %3439 = vmatpush3.bf16.msra.mxu0 (!%p3250_p6), %v3727_v28  ;;  %v2783_v36 = vld [vmem:[%s5162_s17 + $0x10] sm:$0xff] (!%p3250_p6) }
 0xcd1   : > { %v3332_v20 = vpop.f32.mrb[27].mxu1  ;;  %3440 = vmatprep.subr.bf16.mxu0 (!%p3250_p6), %v3728_v58 }
 0xcd2   : > { %v2566_v7 = vadd.f32 %v3330_v52, %v3231_v46  ;;  %v3333_v21 = vadd.f32 %v3332_v20, %v3331_v60  ;;  %v2873_v52 = vsel (!%p3250_p6), %vm2869_vm3, %v2783_v36, 0.0 }
 0xcd4   : > { %v2569_v6 = vadd.f32 %v3333_v21, %v3231_v46  ;;  %v2574_v22 = vadd.f32 %v2566_v7, %v4869_v16  ;;  %v2784_v7 = vld [vmem:[%s5162_s17 + $0x18] sm:$0xff] (!%p3250_p6)  ;;  %3441 = vmatpush3.bf16.msra.mxu0 (!%p3250_p6), %v3728_v58 }
 0xcd5   : > { %v2875_v21 = vsel (!%p3250_p6), %vm2869_vm3, %v2784_v7, 0.0  ;;  %3442 = vmatprep.subr.bf16.mxu0 (!%p3250_p6), %v3729_v37 }
 0xcd6   : > { %2582 = vadd.xlane.f32.xlu0 %v2574_v22  ;;  %v2575_v23 = vadd.f32 %v2569_v6, %v4871_v17  ;;  %v3730_v6 = vld [vmem:[%s5161_s10 + $0x20] sm:$0xff] (!%p3250_p6)  }
 0xcd8   : > { %2584 = vadd.xlane.f32.xlu1 %v2575_v23  ;;  %3443 = vmatpush3.bf16.msra.mxu0 (!%p3250_p6), %v3729_v37 }
 0xcd9   : > { %3444 = vmatprep.subr.bf16.mxu0 (!%p3250_p6), %v3730_v6 }
 0xcdc   : > { %3445 = vmatpush3.bf16.msra.mxu0 (!%p3250_p6), %v3730_v6 }
 0xd5b   : > { %v2579_v24 = vpop.xlane.xlu0 %2578 }
 0xd5c   : > { %v2586_v5 = vmul.f32 0.0078125, %v2579_v24  ;;  %v3731_v24 = vld [vmem:[%s5161_s10 + $0x28] sm:$0xff] (!%p3250_p6)  }
 0xd5d   : > { %v2581_v27 = vpop.xlane.xlu1 %2580  ;;  %3446 = vmatprep.subr.bf16.mxu0 (!%p3250_p6), %v3731_v24 }
 0xd5e   : > { %v2590_v29 = vsub.f32 %v2572_v3, %v2586_v5  ;;  %v2587_v32 = vmul.f32 0.0078125, %v2581_v27  ;;  %v2781_v3 = vld [vmem:[%s5162_s17] sm:$0xff] (!%p3250_p6)  ;;  %v3732_v5 = vld [vmem:[%s5161_s10 + $0x30] sm:$0xff] (!%p3250_p6)   ;;  %3447 = vmatpush3.bf16.msra.mxu0 (!%p3250_p6), %v3731_v24  ;;  %v3733_v27 = vld [vmem:[%s5161_s10 + $0x38] sm:$0xff] (!%p3250_p6)  }
 0xd5f   : > { %v2870_v19 = vsel (!%p3250_p6), %vm2869_vm3, %v2781_v3, 0.0  ;;  %3448 = vmatprep.subr.bf16.mxu0 (!%p3250_p6), %v3732_v5 }
 0xd60   : > { %v2591_v8 = vsub.f32 %v2573_v18, %v2587_v32  ;;  %v2594_v33 = vmul.f32 %v2590_v29, %v2590_v29  ;;  %v2782_v18 = vld [vmem:[%s5162_s17 + $0x8] sm:$0xff] (!%p3250_p6)  ;;  %v3251_v32 = vld [vmem:[%s5163_s30] ss:$0 sm:$0xff] (!%p3250_p6) }
 0xd61   : > { %v2871_v60 = vsel (!%p3250_p6), %vm2869_vm3, %v2782_v18, 0.0 }
 0xd62   : > { %2598 = vadd.xlane.f32.xlu0 %v2594_v33  ;;  %v2595_v34 = vmul.f32 %v2591_v8, %v2591_v8  ;;  %v2872_v20 = vadd.f32 (!%p3250_p6), %v2871_v60, %v2870_v19  ;;  %3449 = vmatpush3.bf16.msra.mxu0 (!%p3250_p6), %v3732_v5 }
 0xd63   : > { %v2583_v35 = vpop.xlane.xlu0 %2582  ;;  %3450 = vmatprep.subr.bf16.mxu0 (!%p3250_p6), %v3733_v27 }
 0xd64   : > { %v2588_v13 = vmul.f32 0.0078125, %v2583_v35  ;;  %2600 = vadd.xlane.f32.xlu1 %v2595_v34 }
 0xd65   : > { %v2585_v55 = vpop.xlane.xlu1 %2584 }
 0xd66   : > { %v2592_v40 = vsub.f32 %v2574_v22, %v2588_v13  ;;  %v2589_v41 = vmul.f32 0.0078125, %v2585_v55  ;;  %v2874_v22 = vadd.f32 (!%p3250_p6), %v2873_v52, %v2872_v20  ;;  %3451 = vmatpush3.bf16.msra.mxu0 (!%p3250_p6), %v3733_v27 }
 0xd68   : > { %v2593_v16 = vsub.f32 %v2575_v23, %v2589_v41  ;;  %v2596_v9 = vmul.f32 %v2592_v40, %v2592_v40  ;;  %v4975_v23 = vadd.f32 (!%p3250_p6), %v2875_v21, %v2874_v22 }
 0xd6a   : > { %2602 = vadd.xlane.f32.xlu0 %v2596_v9  ;;  %v2597_v17 = vmul.f32 %v2593_v16, %v2593_v16 }
 0xd6c   : > { %2604 = vadd.xlane.f32.xlu1 %v2597_v17 }
 0xd7d   : > { %2841 = vperm.xlu1 (!%p3250_p6), %3725, %v2783_v36  }
 0xd80   : > { %2831 = vperm.xlu0 (!%p3250_p6), %3724, %v2781_v3  }
 0xd81   : > { %2846 = vperm.xlu1 (!%p3250_p6), %3725, %v2784_v7  }
 0xd84   : > { %2836 = vperm.xlu0 (!%p3250_p6), %3724, %v2782_v18  }
 0xdef   : > { %v2599_v43 = vpop.xlane.xlu0 %2598 }
 0xdf0   : > { %v2606_v12 = vmul.f32 0.0078125, %v2599_v43 }
 0xdf1   : > { %v2601_v11 = vpop.xlane.xlu1 %2600 }
 0xdf2   : > { %v2610_v14 = vadd.f32 1e-12, %v2606_v12  ;;  %v2607_v48 = vmul.f32 0.0078125, %v2601_v11 }
 0xdf4   : > { %3716 = vrsqrt.f32 %v2610_v14  ;;  %v2611_v49 = vadd.f32 1e-12, %v2607_v48 }
 0xdf6   : > { %3718 = vrsqrt.f32 %v2611_v49 }
 0xdf7   : > { %v2603_v50 = vpop.xlane.xlu0 %2602 }
 0xdf8   : > { %v2608_v51 = vmul.f32 0.0078125, %v2603_v50 }
 0xdf9   : > { %v2605_v53 = vpop.xlane.xlu1 %2604 }
 0xdfa   : > { %v2612_v54 = vadd.f32 1e-12, %v2608_v51  ;;  %v2609_v56 = vmul.f32 0.0078125, %v2605_v53 }
 0xdfc   : > { %3720 = vrsqrt.f32 %v2612_v54  ;;  %v2613_v59 = vadd.f32 1e-12, %v2609_v56 }
 0xdfd   : > { %v2842_v28 = vpop.permute.xlu1 (!%p3250_p6), %2841 }
 0xdfe   : > { %v3717_v61 = vpop.eup %3716  ;;  %3722 = vrsqrt.f32 %v2613_v59 }
 0xdff   : > { %v2618_v62 = vmul.f32 %v3717_v61, %v2590_v29 }
 0xe00   : > { %v3719_v39 = vpop.eup %3718 }
 0xe01   : > { %v2628_v45 = vmul.f32 %v3248_v38, %v2618_v62  ;;  %v2619_v63 = vmul.f32 %v3719_v39, %v2591_v8  ;;  %v2847_v27 = vpop.permute.xlu1 (!%p3250_p6), %2846 }
 0xe03   : > { %v2638_v0 = vadd.f32 %v3249_v42, %v2628_v45  ;;  %v2629_v26 = vmul.f32 %v3248_v38, %v2619_v63  ;;  %v2777_v45 = vld [vmem:[%s5166_s24] sm:$0xff] (!%p3250_p6)  ;;  %v2779_v63 = vld [vmem:[%s5166_s24 + $0x10] sm:$0xff] (!%p3250_p6) }
 0xe05   : > { %2642 = vst [vmem:[#allocation2] sm:$0xff] %v2638_v0  ;;  %v2639_v1 = vadd.f32 %v3249_v42, %v2629_v26  ;;  %v2780_v26 = vld [vmem:[%s5166_s24 + $0x18] sm:$0xff] (!%p3250_p6) }
 0xe06   : > { %v3721_v2 = vpop.eup %3720 }
 0xe07   : > { %2643 = vst [vmem:[#allocation2 + $0x8] sm:$0xff] %v2639_v1  ;;  %v2620_v30 = vmul.f32 %v3721_v2, %v2592_v40  ;;  %v2650_v57 = vpack.c.bf16 (!%p3250_p6), %v2639_v1, %v2638_v0  ;;  %v2778_v0 = vld [vmem:[%s5166_s24 + $0x8] sm:$0xff] (!%p3250_p6) }
 0xe08   : > { %v3723_v31 = vpop.eup %3722 }
 0xe09   : > { %v2630_v4 = vmul.f32 %v3248_v38, %v2620_v30  ;;  %v2621_v15 = vmul.f32 %v3723_v31, %v2593_v16  ;;  %2649 = sbr.rel (%p3250_p6) target bundleno = 4019 (0xfb3), region = 148  ;;  %3452 = vmatprep.mubr.bf16.mxu0 (!%p3250_p6), %v2650_v57  ;;  %v2832_v57 = vpop.permute.xlu0 (!%p3250_p6), %2831 }
 0xe0b   : > { %v2640_v44 = vadd.f32 %v3249_v42, %v2630_v4  ;;  %v2631_v46 = vmul.f32 %v3248_v38, %v2621_v15 }
 0xe0d   : > { %2644 = vst [vmem:[#allocation2 + $0x10] sm:$0xff] %v2640_v44  ;;  %v2641_v47 = vadd.f32 %v3249_v42, %v2631_v46  ;;  %v2837_v5 = vpop.permute.xlu0 (!%p3250_p6), %2836 }
 0xe0f   : > { %2645 = vst [vmem:[#allocation2 + $0x18] sm:$0xff] %v2641_v47  ;;  %v2651_v29 = vpack.c.bf16 (!%p3250_p6), %v2641_v47, %v2640_v44 }
 0xe11   : > { %3453 = vmatmul.mubr.bf16.vlgmr.msra.gmra.mrb[0].mxu0 %v2651_v29 }
 0xee4   : > { %v3454_v8 = vpop.f32.mrb[0].mxu0 }
 0xee5   : > { %v2766_v33 = vadd.f32 %v3454_v8, %v3251_v32  ;;  %v2757_v34 = vpop.f32.mrb[1].mxu0 }
 0xee6   : > { %v2758_v35 = vadd.f32 %v3251_v32, %v2757_v34  ;;  %v3455_v13 = vpop.f32.mrb[2].mxu0 }
 0xee7   : > { %2775 = vst.msk [vmem:[%s5164_s26 + $0x10] sm:$0xff] %vm2772_vm4, %v2766_v33  ;;  %v2799_v55 = vand.u32 2147483647, %v2766_v33  ;;  %v2769_v40 = vadd.f32 %v3455_v13, %v3251_v32  ;;  %v2760_v41 = vpop.f32.mrb[3].mxu0  ;;  %v2787_v30 = vmax.f32 %v2766_v33, 0.0  ;;  %v2791_v31 = vmul.f32 %v2779_v63, %v2766_v33 }
 0xee8   : > { %2773 = vst.msk [vmem:[%s5165_s23] sm:$0xff] %vm2772_vm4, %v2758_v35  ;;  %v2797_v16 = vand.u32 2147483647, %v2758_v35  ;;  %v2761_v9 = vadd.f32 %v3251_v32, %v2760_v41  ;;  %v2785_v1 = vmax.f32 %v2758_v35, 0.0  ;;  %v2789_v2 = vmul.f32 %v2777_v45, %v2758_v35 }
 0xee9   : > { %v2803_v17 = vsub.f32 0.0, %v2799_v55  ;;  %2776 = vst.msk [vmem:[%s5165_s23 + $0x18] sm:$0xff] %vm2772_vm4, %v2769_v40  ;;  %v2800_v43 = vand.u32 2147483647, %v2769_v40  ;;  %v2788_v46 = vmax.f32 %v2769_v40, 0.0  ;;  %v2792_v47 = vmul.f32 %v2780_v26, %v2769_v40 }
 0xeea   : > { %v2801_v12 = vsub.f32 0.0, %v2797_v16  ;;  %2774 = vst.msk [vmem:[%s5165_s23 + $0x8] sm:$0xff] %vm2772_vm4, %v2761_v9  ;;  %v2798_v11 = vand.u32 2147483647, %v2761_v9  ;;  %v2786_v4 = vmax.f32 %v2761_v9, 0.0  ;;  %v2790_v15 = vmul.f32 %v2778_v0, %v2761_v9 }
 0xeeb   : > { %v2809_v14 = vmul.f32 1.442695, %v2803_v17  ;;  %v2804_v48 = vsub.f32 0.0, %v2800_v43  ;;  %v2793_v37 = vsub.f32 %v2785_v1, %v2789_v2  ;;  %v2795_v36 = vsub.f32 %v2787_v30, %v2791_v31 }
 0xeec   : > { %v2805_v49 = vmul.f32 1.442695, %v2801_v12  ;;  %v2802_v50 = vsub.f32 0.0, %v2798_v11  ;;  %v2794_v19 = vsub.f32 %v2786_v4, %v2790_v15  ;;  %v2796_v21 = vsub.f32 %v2788_v46, %v2792_v47 }
 0xeed   : > { %3734 = vpow2.f32 %v2809_v14  ;;  %v2811_v51 = vmul.f32 1.442695, %v2804_v48  ;;  %v2877_v48 = vrot.slane %v4975_v23, 4 }
 0xeee   : > { %3736 = vpow2.f32 %v2805_v49  ;;  %v2807_v53 = vmul.f32 1.442695, %v2802_v50 }
 0xeef   : > { %3738 = vpow2.f32 %v2811_v51  ;;  %v2878_v49 = vadd.f32 %v2877_v48, %v4975_v23 }
 0xef0   : > { %3740 = vpow2.f32 %v2807_v53 }
 0xef1   : > { %v2879_v50 = vrot.slane %v2878_v49, 2 }
 0xef3   : > { %v2880_v51 = vadd.f32 %v2879_v50, %v2878_v49 }
 0xef5   : > { %v2881_v53 = vrot.slane %v2880_v51, 1 }
 0xef7   : > { %v3735_v54 = vpop.eup %3734 }
 0xef8   : > { %v3737_v56 = vpop.eup %3736  ;;  %v2815_v59 = vadd.f32 1.0, %v3735_v54  ;;  %v2882_v54 = vadd.f32 %v2881_v53, %v2880_v51 }
 0xef9   : > { %v3739_v61 = vpop.eup %3738  ;;  %v2813_v38 = vadd.f32 1.0, %v3737_v56 }
 0xefa   : > { %v3741_v62 = vpop.eup %3740  ;;  %3742 = vlog2.f32 %v2815_v59  ;;  %v2816_v39 = vadd.f32 1.0, %v3739_v61 }
 0xefb   : > { %3744 = vlog2.f32 %v2813_v38  ;;  %v2814_v42 = vadd.f32 1.0, %v3741_v62 }
 0xefc   : > { %3746 = vlog2.f32 %v2816_v39 }
 0xefd   : > { %3748 = vlog2.f32 %v2814_v42 }
 0xefe   : > { %3750 = vrcp.f32 %v2882_v54 }
 0xf04   : > { %v3743_v44 = vpop.eup %3742 }
 0xf05   : > { %v3745_v10 = vpop.eup %3744  ;;  %v2822_v25 = vmul.f32 0.6931472, %v3743_v44 }
 0xf06   : > { %v3747_v58 = vpop.eup %3746  ;;  %v2818_v3 = vmul.f32 0.6931472, %v3745_v10 }
 0xf07   : > { %v3749_v18 = vpop.eup %3748  ;;  %v2824_v52 = vmul.f32 0.6931472, %v3747_v58  ;;  %v2827_v20 = vadd.f32 %v2822_v25, %v2795_v36 }
 0xf08   : > { %v2825_v60 = vadd.f32 %v2818_v3, %v2793_v37  ;;  %v2820_v7 = vmul.f32 0.6931472, %v3749_v18  ;;  %v3751_v56 = vpop.eup %3750 }
 0xf09   : > { %v2828_v24 = vadd.f32 %v2824_v52, %v2796_v21  ;;  %v2851_v29 = vmul.f32 %v2842_v28, %v2827_v20 }
 0xf0a   : > { %v2849_v6 = vmul.f32 %v2832_v57, %v2825_v60  ;;  %v2826_v22 = vadd.f32 %v2820_v7, %v2794_v19 }
 0xf0b   : > { %v2852_v34 = vmul.f32 %v2847_v27, %v2828_v24  ;;  %v2856_v13 = vsel %vm2772_vm4, %v2851_v29, 0.0 }
 0xf0c   : > { %v2850_v32 = vmul.f32 %v2837_v5, %v2826_v22  ;;  %v2853_v8 = vsel %vm2772_vm4, %v2849_v6, 0.0 }
 0xf0d   : > { %v2858_v40 = vsel %vm2772_vm4, %v2852_v34, 0.0 }
 0xf0e   : > { %v2854_v33 = vsel %vm2772_vm4, %v2850_v32, 0.0 }
 0xf0f   : > { %v2855_v35 = vadd.f32 %v2854_v33, %v2853_v8 }
 0xf11   : > { %v2857_v55 = vadd.f32 %v2856_v13, %v2855_v35 }
 0xf13   : > { %v2859_v41 = vadd.f32 %v2858_v40, %v2857_v55 }
 0xf15   : > { %v2860_v16 = vrot.slane %v2859_v41, 4 }
 0xf17   : > { %v2861_v9 = vadd.f32 %v2860_v16, %v2859_v41 }
 0xf19   : > { %v2862_v17 = vrot.slane %v2861_v9, 2 }
 0xf1b   : > { %v2863_v43 = vadd.f32 %v2862_v17, %v2861_v9 }
 0xf1d   : > { %v2864_v12 = vrot.slane %v2863_v43, 1 }
 0xf1f   : > { %v2865_v11 = vadd.f32 %v2864_v12, %v2863_v43 }
 0xf21   : > { %v2866_v14 = vsel %vm2772_vm4, %v2865_v11, 0.0 }
 0xf22   : > { %2867 = vadd.xlane.f32.xlu0 %v2866_v14 }
 0xfaf   : > { %v2868_v59 = vpop.xlane.xlu0 %2867 }
 0xfb0   : > { %v2884_v61 = vmul.f32 %v3751_v56, %v2868_v59 }
 0xfb2   : > { %2886 = vst.msk [vmem:[#allocation16] sm:$0x1] %vm2885_vm5, %v2884_v61 }
 0xfb3 PF: > { %p3529_p1 = scmp.eq.s32.totalorder %s4268_s3, 1  ;;  %s4138_s30 = smov [#allocation16]  }
 0xfb4   : > { %s2897_s4 = sshll.u32 %s4138_s30, 4  ;;  %s2898_s4 = int_to_ptr.vmem [resolvable:$true] %s2897_s4 }
 0xfb5   : > { %s4048_s13 = scalar_lea.vmem %s2898_s4, 16  ;;  %s4054_s26 = scalar_lea.vmem %s2898_s4, 32 }
 0xfb6   : > { %p4049_p8 = scmp.ne.s32.totalorder %s2898_s4, %s4048_s13  ;;  %p4055_p5 = scmp.lt.s32.totalorder %s2898_s4, %s2898_s4 }
 0xfb7   : > { %p4056_p12 = scmp.lt.s32.totalorder %s4054_s26, %s4048_s13 }
 0xfb8   : > { %p4050_p9 = pnand %p4049_p8, %p3529_p1 }
 0xfb9   : > { %p4057_p7 = por %p4056_p12, %p4055_p5 }
 0xfba   : > { %p4051_p2 = pneg %p4050_p9 }
 0xfbc   : > { %p4058_p10 = pnand %p4057_p7, %p4051_p2 }
 0xfbe   : > { %4061 = shalt.err (!%p4058_p10)
}
 0xfbf   : > { %s5167_s0 = sld [smem:[#allocation40_spill]] }
 0xfc5   : > { %s4062_s8 = scalar_lea.hbm %s5167_s0, 16 }
 0xfc6   : > { %p4063_p3 = scmp.ne.s32.totalorder %s5167_s0, %s4062_s8  ;;  %p4068_p13 = scmp.lt.u32.totalorder %s4062_s8, %s5167_s0 }
 0xfc8   : > { %p4064_p11 = pnand %p4063_p3, %p3529_p1 }
 0xfca   : > { %p4065_p0 = pneg %p4064_p11 }
 0xfcc   : > { %p4070_p4 = pnand %p4068_p13, %p4065_p0 }
 0xfce   : > { %4073 = shalt.err (!%p4070_p4)
}
 0xfcf   : > { %3489 = dma.vmem_to_hbm [thread:$0]  (%p3529_p1), %s2898_s4, 16, %s5167_s0, [#allocation5]  }
 0xfd0   : > { %4103 = dma.done.wait (%p3529_p1), [#allocation5], 16  }
 0xfd1   : > { %4105 = vsyncadd (%p3529_p1), [#allocation5], 4294967280 }
 0xfd2 PF: > { %s5168_s27 = sld [smem:[#allocation22_spill]]  ;;  %s5169_s20 = sld [smem:[#allocation21_spill]] }
 0xfd3   : > { %s5170_s26 = sld [smem:[#allocation23_spill]]  ;;  %s5171_s2 = smov %s4112_s25 }
 0xfd8   : > { %p32_p6 = scmp.ge.s32.totalorder %s5168_s27, 4   ;;  %s5172_s25 = smov %s5169_s20 }
 0xfda   :  { %34 = sbr.rel (!%p32_p6) target bundleno = 22 (0x16), region = 249 }
 0xfe1   :  { %2913 = vsyncpa [#allocation4], 1 }
 0xfe2   :  { %2915 = vsyncpa [#allocation4 + $0x1], 1 }
 0xfe3   :  { %2916 = vsyncpa [#allocation7], 1 }
 0xfe4   :  { %2917 = vsyncpa [#allocation5], 1 }
 0xfe5   :  { %2919 = vsyncpa [#allocation5 + $0x1], 1 }

</bundles_post_ra>
